<compile_context>
chip_gen: v5e
topology: v5e:2x2
jax: 0.10.0
libtpu: 0.0.40
codegen_flags: <defaults>
</compile_context>

<pallas_src>
import functools

import jax
import jax.numpy as jnp
from jax.experimental import pallas as pl
from jax.experimental.pallas import tpu as pltpu


# ---------------------------------------------------------------------------
# Fused Pnet kernel.  Gate order follows PyTorch: i, f, g, o.
# refs = [x, (w_ih_t, w_hh_t, bias) * num_layers, w_dec_t, b_dec, out, seq_scr]
# ---------------------------------------------------------------------------
def _pnet_kernel(*refs, T, B, H, num_layers):
    x_ref = refs[0]
    w_refs = refs[1:1 + 3 * num_layers]
    w_dec_ref = refs[1 + 3 * num_layers]
    b_dec_ref = refs[2 + 3 * num_layers]
    out_ref = refs[-2]
    seq_scr = refs[-1]          # VMEM (T*B, H): inter-layer hidden sequence

    h = None
    for layer in range(num_layers):
        w_ih = w_refs[3 * layer][...]        # (I_l, 4H)
        w_hh = w_refs[3 * layer + 1][...]    # (H, 4H)
        bias = w_refs[3 * layer + 2][...]    # (1, 4H)

        # Input sequence for this layer, flat over (time, batch).
        seq = x_ref[...] if layer == 0 else seq_scr[...]      # (T*B, I_l)

        # Hoisted input projection: one matmul covering all T timesteps.
        xproj = (
            jnp.dot(seq, w_ih, preferred_element_type=jnp.float32) + bias
        )  # (T*B, 4H)

        h = jnp.zeros((B, H), jnp.float32)
        c = jnp.zeros((B, H), jnp.float32)
        last_layer = layer == num_layers - 1

        # Sequential recurrence, fully unrolled (T is small & static).
        for t in range(T):
            gates = xproj[t * B:(t + 1) * B, :] + jnp.dot(
                h, w_hh, preferred_element_type=jnp.float32)      # (B, 4H)
            sig = jax.nn.sigmoid(gates)   # full-vreg activations
            tnh = jnp.tanh(gates)
            i_g = sig[:, 0:H]
            f_g = sig[:, H:2 * H]
            g_g = tnh[:, 2 * H:3 * H]
            o_g = sig[:, 3 * H:4 * H]
            c = f_g * c + i_g * g_g
            h = o_g * jnp.tanh(c)
            if not last_layer:
                seq_scr[pl.ds(t * B, B), :] = h    # feed next layer (VMEM only)

    # Decoder on the last layer's final hidden state (== state[0][-1]).
    out_ref[...] = (
        jnp.dot(h, w_dec_ref[...], preferred_element_type=jnp.float32)
        + b_dec_ref[...]
    )


# ---------------------------------------------------------------------------
# Wrapper: one pallas_call for the whole forward pass.
# ---------------------------------------------------------------------------
def pnet_forward(x, params):
    """x: (T, B, I) float32 -> (B, 2) float32  (same as Pnet.forward)."""
    T, B, I = x.shape
    H = params["lstm"][0]["w_hh_t"].shape[0]
    num_layers = len(params["lstm"])

    x_flat = x.reshape(T * B, I)   # flatten (time, batch) outside the kernel

    args = [x_flat]
    in_specs = [pl.BlockSpec((T * B, I), lambda: (0, 0))]
    for layer, lp in enumerate(params["lstm"]):
        in_sz = I if layer == 0 else H
        args += [lp["w_ih_t"], lp["w_hh_t"], lp["bias"]]
        in_specs += [
            pl.BlockSpec((in_sz, 4 * H), lambda: (0, 0)),
            pl.BlockSpec((H, 4 * H), lambda: (0, 0)),
            pl.BlockSpec((1, 4 * H), lambda: (0, 0)),
        ]
    args += [params["dec_w_t"], params["dec_b"]]
    in_specs += [
        pl.BlockSpec((H, 2), lambda: (0, 0)),
        pl.BlockSpec((1, 2), lambda: (0, 0)),
    ]

    kernel = functools.partial(_pnet_kernel, T=T, B=B, H=H,
                               num_layers=num_layers)

    return pl.pallas_call(
        kernel,
        out_shape=jax.ShapeDtypeStruct((B, 2), jnp.float32),
        in_specs=in_specs,
        out_specs=pl.BlockSpec((B, 2), lambda: (0, 0)),
        scratch_shapes=[pltpu.VMEM((T * B, H), jnp.float32)],
    )(*args)


# ---------------------------------------------------------------------------
# Deterministic parameter init (shapes match nn.LSTM(34, H, num_layers) and
# nn.Linear(H, 2); synthetic uniform(-1/sqrt(H), 1/sqrt(H)) values).
# ---------------------------------------------------------------------------
def init_params(key, input_size, num_hiddens, num_layers):
    H = num_hiddens
    k = 1.0 / jnp.sqrt(jnp.float32(H))
    params = {"lstm": []}
    for layer in range(num_layers):
        in_sz = input_size if layer == 0 else H
        key, k1, k2, k3, k4 = jax.random.split(key, 5)
        w_ih = jax.random.uniform(k1, (4 * H, in_sz), jnp.float32, -k, k)
        w_hh = jax.random.uniform(k2, (4 * H, H), jnp.float32, -k, k)
        b_ih = jax.random.uniform(k3, (4 * H,), jnp.float32, -k, k)
        b_hh = jax.random.uniform(k4, (4 * H,), jnp.float32, -k, k)
        params["lstm"].append({
            "w_ih_t": jnp.transpose(w_ih),            # (in_sz, 4H)
            "w_hh_t": jnp.transpose(w_hh),            # (H, 4H)
            "bias": (b_ih + b_hh).reshape(1, 4 * H),  # (1, 4H)
        })
    key, k5, k6 = jax.random.split(key, 3)
    dec_w = jax.random.uniform(k5, (2, H), jnp.float32, -k, k)
    dec_b = jax.random.uniform(k6, (2,), jnp.float32, -k, k)
    params["dec_w_t"] = jnp.transpose(dec_w)          # (H, 2)
    params["dec_b"] = dec_b.reshape(1, 2)             # (1, 2)
    return params


if __name__ == "__main__":
    # Small shapes consistent with the module: input_size = 17*2 = 34.
    window_size = 8        # seq length T
    batch = 2
    num_hiddens = 32
    num_layers = 2
    input_size = 17 * 2

    key = jax.random.PRNGKey(0)
    key, kx = jax.random.split(key)
    x = jax.random.normal(kx, (window_size, batch, input_size), jnp.float32)

    params = init_params(key, input_size, num_hiddens, num_layers)

    out = pnet_forward(x, params)
    out = jax.block_until_ready(out)
    assert out.shape == (batch, 2), out.shape
    print("KERNEL_OK")
</pallas_src>

<mosaic_0001>
module attributes {stable_mosaic.version = 11 : i64} {
  func.func @_pnet_kernel(%arg0: memref<16x34xf32, #tpu.memory_space<vmem>>, %arg1: memref<34x128xf32, #tpu.memory_space<vmem>>, %arg2: memref<32x128xf32, #tpu.memory_space<vmem>>, %arg3: memref<1x128xf32, #tpu.memory_space<vmem>>, %arg4: memref<32x128xf32, #tpu.memory_space<vmem>>, %arg5: memref<32x128xf32, #tpu.memory_space<vmem>>, %arg6: memref<1x128xf32, #tpu.memory_space<vmem>>, %arg7: memref<32x2xf32, #tpu.memory_space<vmem>>, %arg8: memref<1x2xf32, #tpu.memory_space<vmem>>, %arg9: memref<2x2xf32, #tpu.memory_space<vmem>>, %arg10: memref<16x32xf32, #tpu.memory_space<vmem>>) attributes {dimension_semantics = [], scalar_prefetch = 0 : i64, scratch_operands = 1 : i64, tpu.core_type = #tpu.core_type<tc>} {
    %c0 = arith.constant 0 : index
    %c0_0 = arith.constant 0 : index
    %0 = vector.load %arg1[%c0, %c0_0] : memref<34x128xf32, #tpu.memory_space<vmem>>, vector<34x128xf32>
    %c0_1 = arith.constant 0 : index
    %c0_2 = arith.constant 0 : index
    %1 = vector.load %arg2[%c0_1, %c0_2] : memref<32x128xf32, #tpu.memory_space<vmem>>, vector<32x128xf32>
    %c0_3 = arith.constant 0 : index
    %c0_4 = arith.constant 0 : index
    %2 = vector.load %arg3[%c0_3, %c0_4] : memref<1x128xf32, #tpu.memory_space<vmem>>, vector<1x128xf32>
    %c0_5 = arith.constant 0 : index
    %c0_6 = arith.constant 0 : index
    %3 = vector.load %arg0[%c0_5, %c0_6] : memref<16x34xf32, #tpu.memory_space<vmem>>, vector<16x34xf32>
    %cst = arith.constant dense<0.000000e+00> : vector<16x128xf32>
    %4 = tpu.matmul %3, %0, %cst {dimension_numbers = #tpu.dot_dimension_numbers<[1], [0], [0], [1], [0, 0, 1, 1], [], []>} : vector<16x34xf32>, vector<34x128xf32>, vector<16x128xf32> -> vector<16x128xf32>
    %5 = vector.broadcast %2 : vector<1x128xf32> to vector<16x128xf32>
    %6 = arith.addf %4, %5 : vector<16x128xf32>
    %cst_7 = arith.constant 0.000000e+00 : f32
    %7 = vector.broadcast %cst_7 : f32 to vector<2x32xf32>
    %cst_8 = arith.constant 0.000000e+00 : f32
    %8 = vector.broadcast %cst_8 : f32 to vector<2x32xf32>
    %9 = vector.extract_strided_slice %6 {offsets = [0, 0], sizes = [2, 128], strides = [1, 1]} : vector<16x128xf32> to vector<2x128xf32>
    %cst_9 = arith.constant dense<0.000000e+00> : vector<2x128xf32>
    %10 = tpu.matmul %7, %1, %cst_9 {dimension_numbers = #tpu.dot_dimension_numbers<[1], [0], [0], [1], [0, 0, 1, 1], [], []>} : vector<2x32xf32>, vector<32x128xf32>, vector<2x128xf32> -> vector<2x128xf32>
    %11 = arith.addf %9, %10 : vector<2x128xf32>
    %12 = arith.negf %11 : vector<2x128xf32>
    %13 = math.exp %12 : vector<2x128xf32>
    %cst_10 = arith.constant 1.000000e+00 : f32
    %14 = vector.broadcast %cst_10 : f32 to vector<2x128xf32>
    %15 = arith.addf %14, %13 : vector<2x128xf32>
    %16 = arith.divf %14, %15 : vector<2x128xf32>
    %17 = math.tanh %11 : vector<2x128xf32>
    %18 = vector.extract_strided_slice %16 {offsets = [0, 0], sizes = [2, 32], strides = [1, 1]} : vector<2x128xf32> to vector<2x32xf32>
    %19 = vector.extract_strided_slice %16 {offsets = [0, 32], sizes = [2, 32], strides = [1, 1]} : vector<2x128xf32> to vector<2x32xf32>
    %20 = vector.extract_strided_slice %17 {offsets = [0, 64], sizes = [2, 32], strides = [1, 1]} : vector<2x128xf32> to vector<2x32xf32>
    %21 = vector.extract_strided_slice %16 {offsets = [0, 96], sizes = [2, 32], strides = [1, 1]} : vector<2x128xf32> to vector<2x32xf32>
    %22 = arith.mulf %19, %8 : vector<2x32xf32>
    %23 = arith.mulf %18, %20 : vector<2x32xf32>
    %24 = arith.addf %22, %23 : vector<2x32xf32>
    %25 = math.tanh %24 : vector<2x32xf32>
    %26 = arith.mulf %21, %25 : vector<2x32xf32>
    %c0_11 = arith.constant 0 : index
    %c0_12 = arith.constant 0 : index
    %27 = vector.load %arg10[%c0_11, %c0_12] : memref<16x32xf32, #tpu.memory_space<vmem>>, vector<2x32xf32>
    tpu.vector_store %arg10[%c0_11, %c0_12], %26 {strides = array<i32>} : memref<16x32xf32, #tpu.memory_space<vmem>>, vector<2x32xf32>,
    %28 = vector.extract_strided_slice %6 {offsets = [2, 0], sizes = [2, 128], strides = [1, 1]} : vector<16x128xf32> to vector<2x128xf32>
    %cst_13 = arith.constant dense<0.000000e+00> : vector<2x128xf32>
    %29 = tpu.matmul %26, %1, %cst_13 {dimension_numbers = #tpu.dot_dimension_numbers<[1], [0], [0], [1], [0, 0, 1, 1], [], []>} : vector<2x32xf32>, vector<32x128xf32>, vector<2x128xf32> -> vector<2x128xf32>
    %30 = arith.addf %28, %29 : vector<2x128xf32>
    %31 = arith.negf %30 : vector<2x128xf32>
    %32 = math.exp %31 : vector<2x128xf32>
    %cst_14 = arith.constant 1.000000e+00 : f32
    %33 = vector.broadcast %cst_14 : f32 to vector<2x128xf32>
    %34 = arith.addf %33, %32 : vector<2x128xf32>
    %35 = arith.divf %33, %34 : vector<2x128xf32>
    %36 = math.tanh %30 : vector<2x128xf32>
    %37 = vector.extract_strided_slice %35 {offsets = [0, 0], sizes = [2, 32], strides = [1, 1]} : vector<2x128xf32> to vector<2x32xf32>
    %38 = vector.extract_strided_slice %35 {offsets = [0, 32], sizes = [2, 32], strides = [1, 1]} : vector<2x128xf32> to vector<2x32xf32>
    %39 = vector.extract_strided_slice %36 {offsets = [0, 64], sizes = [2, 32], strides = [1, 1]} : vector<2x128xf32> to vector<2x32xf32>
    %40 = vector.extract_strided_slice %35 {offsets = [0, 96], sizes = [2, 32], strides = [1, 1]} : vector<2x128xf32> to vector<2x32xf32>
    %41 = arith.mulf %38, %24 : vector<2x32xf32>
    %42 = arith.mulf %37, %39 : vector<2x32xf32>
    %43 = arith.addf %41, %42 : vector<2x32xf32>
    %44 = math.tanh %43 : vector<2x32xf32>
    %45 = arith.mulf %40, %44 : vector<2x32xf32>
    %c2 = arith.constant 2 : index
    %c0_15 = arith.constant 0 : index
    %46 = vector.load %arg10[%c2, %c0_15] : memref<16x32xf32, #tpu.memory_space<vmem>>, vector<2x32xf32>
    tpu.vector_store %arg10[%c2, %c0_15], %45 {strides = array<i32>} : memref<16x32xf32, #tpu.memory_space<vmem>>, vector<2x32xf32>,
    %47 = vector.extract_strided_slice %6 {offsets = [4, 0], sizes = [2, 128], strides = [1, 1]} : vector<16x128xf32> to vector<2x128xf32>
    %cst_16 = arith.constant dense<0.000000e+00> : vector<2x128xf32>
    %48 = tpu.matmul %45, %1, %cst_16 {dimension_numbers = #tpu.dot_dimension_numbers<[1], [0], [0], [1], [0, 0, 1, 1], [], []>} : vector<2x32xf32>, vector<32x128xf32>, vector<2x128xf32> -> vector<2x128xf32>
    %49 = arith.addf %47, %48 : vector<2x128xf32>
    %50 = arith.negf %49 : vector<2x128xf32>
    %51 = math.exp %50 : vector<2x128xf32>
    %cst_17 = arith.constant 1.000000e+00 : f32
    %52 = vector.broadcast %cst_17 : f32 to vector<2x128xf32>
    %53 = arith.addf %52, %51 : vector<2x128xf32>
    %54 = arith.divf %52, %53 : vector<2x128xf32>
    %55 = math.tanh %49 : vector<2x128xf32>
    %56 = vector.extract_strided_slice %54 {offsets = [0, 0], sizes = [2, 32], strides = [1, 1]} : vector<2x128xf32> to vector<2x32xf32>
    %57 = vector.extract_strided_slice %54 {offsets = [0, 32], sizes = [2, 32], strides = [1, 1]} : vector<2x128xf32> to vector<2x32xf32>
    %58 = vector.extract_strided_slice %55 {offsets = [0, 64], sizes = [2, 32], strides = [1, 1]} : vector<2x128xf32> to vector<2x32xf32>
    %59 = vector.extract_strided_slice %54 {offsets = [0, 96], sizes = [2, 32], strides = [1, 1]} : vector<2x128xf32> to vector<2x32xf32>
    %60 = arith.mulf %57, %43 : vector<2x32xf32>
    %61 = arith.mulf %56, %58 : vector<2x32xf32>
    %62 = arith.addf %60, %61 : vector<2x32xf32>
    %63 = math.tanh %62 : vector<2x32xf32>
    %64 = arith.mulf %59, %63 : vector<2x32xf32>
    %c4 = arith.constant 4 : index
    %c0_18 = arith.constant 0 : index
    %65 = vector.load %arg10[%c4, %c0_18] : memref<16x32xf32, #tpu.memory_space<vmem>>, vector<2x32xf32>
    tpu.vector_store %arg10[%c4, %c0_18], %64 {strides = array<i32>} : memref<16x32xf32, #tpu.memory_space<vmem>>, vector<2x32xf32>,
    %66 = vector.extract_strided_slice %6 {offsets = [6, 0], sizes = [2, 128], strides = [1, 1]} : vector<16x128xf32> to vector<2x128xf32>
    %cst_19 = arith.constant dense<0.000000e+00> : vector<2x128xf32>
    %67 = tpu.matmul %64, %1, %cst_19 {dimension_numbers = #tpu.dot_dimension_numbers<[1], [0], [0], [1], [0, 0, 1, 1], [], []>} : vector<2x32xf32>, vector<32x128xf32>, vector<2x128xf32> -> vector<2x128xf32>
    %68 = arith.addf %66, %67 : vector<2x128xf32>
    %69 = arith.negf %68 : vector<2x128xf32>
    %70 = math.exp %69 : vector<2x128xf32>
    %cst_20 = arith.constant 1.000000e+00 : f32
    %71 = vector.broadcast %cst_20 : f32 to vector<2x128xf32>
    %72 = arith.addf %71, %70 : vector<2x128xf32>
    %73 = arith.divf %71, %72 : vector<2x128xf32>
    %74 = math.tanh %68 : vector<2x128xf32>
    %75 = vector.extract_strided_slice %73 {offsets = [0, 0], sizes = [2, 32], strides = [1, 1]} : vector<2x128xf32> to vector<2x32xf32>
    %76 = vector.extract_strided_slice %73 {offsets = [0, 32], sizes = [2, 32], strides = [1, 1]} : vector<2x128xf32> to vector<2x32xf32>
    %77 = vector.extract_strided_slice %74 {offsets = [0, 64], sizes = [2, 32], strides = [1, 1]} : vector<2x128xf32> to vector<2x32xf32>
    %78 = vector.extract_strided_slice %73 {offsets = [0, 96], sizes = [2, 32], strides = [1, 1]} : vector<2x128xf32> to vector<2x32xf32>
    %79 = arith.mulf %76, %62 : vector<2x32xf32>
    %80 = arith.mulf %75, %77 : vector<2x32xf32>
    %81 = arith.addf %79, %80 : vector<2x32xf32>
    %82 = math.tanh %81 : vector<2x32xf32>
    %83 = arith.mulf %78, %82 : vector<2x32xf32>
    %c6 = arith.constant 6 : index
    %c0_21 = arith.constant 0 : index
    %84 = vector.load %arg10[%c6, %c0_21] : memref<16x32xf32, #tpu.memory_space<vmem>>, vector<2x32xf32>
    tpu.vector_store %arg10[%c6, %c0_21], %83 {strides = array<i32>} : memref<16x32xf32, #tpu.memory_space<vmem>>, vector<2x32xf32>,
    %85 = vector.extract_strided_slice %6 {offsets = [8, 0], sizes = [2, 128], strides = [1, 1]} : vector<16x128xf32> to vector<2x128xf32>
    %cst_22 = arith.constant dense<0.000000e+00> : vector<2x128xf32>
    %86 = tpu.matmul %83, %1, %cst_22 {dimension_numbers = #tpu.dot_dimension_numbers<[1], [0], [0], [1], [0, 0, 1, 1], [], []>} : vector<2x32xf32>, vector<32x128xf32>, vector<2x128xf32> -> vector<2x128xf32>
    %87 = arith.addf %85, %86 : vector<2x128xf32>
    %88 = arith.negf %87 : vector<2x128xf32>
    %89 = math.exp %88 : vector<2x128xf32>
    %cst_23 = arith.constant 1.000000e+00 : f32
    %90 = vector.broadcast %cst_23 : f32 to vector<2x128xf32>
    %91 = arith.addf %90, %89 : vector<2x128xf32>
    %92 = arith.divf %90, %91 : vector<2x128xf32>
    %93 = math.tanh %87 : vector<2x128xf32>
    %94 = vector.extract_strided_slice %92 {offsets = [0, 0], sizes = [2, 32], strides = [1, 1]} : vector<2x128xf32> to vector<2x32xf32>
    %95 = vector.extract_strided_slice %92 {offsets = [0, 32], sizes = [2, 32], strides = [1, 1]} : vector<2x128xf32> to vector<2x32xf32>
    %96 = vector.extract_strided_slice %93 {offsets = [0, 64], sizes = [2, 32], strides = [1, 1]} : vector<2x128xf32> to vector<2x32xf32>
    %97 = vector.extract_strided_slice %92 {offsets = [0, 96], sizes = [2, 32], strides = [1, 1]} : vector<2x128xf32> to vector<2x32xf32>
    %98 = arith.mulf %95, %81 : vector<2x32xf32>
    %99 = arith.mulf %94, %96 : vector<2x32xf32>
    %100 = arith.addf %98, %99 : vector<2x32xf32>
    %101 = math.tanh %100 : vector<2x32xf32>
    %102 = arith.mulf %97, %101 : vector<2x32xf32>
    %c8 = arith.constant 8 : index
    %c0_24 = arith.constant 0 : index
    %103 = vector.load %arg10[%c8, %c0_24] : memref<16x32xf32, #tpu.memory_space<vmem>>, vector<2x32xf32>
    tpu.vector_store %arg10[%c8, %c0_24], %102 {strides = array<i32>} : memref<16x32xf32, #tpu.memory_space<vmem>>, vector<2x32xf32>,
    %104 = vector.extract_strided_slice %6 {offsets = [10, 0], sizes = [2, 128], strides = [1, 1]} : vector<16x128xf32> to vector<2x128xf32>
    %cst_25 = arith.constant dense<0.000000e+00> : vector<2x128xf32>
    %105 = tpu.matmul %102, %1, %cst_25 {dimension_numbers = #tpu.dot_dimension_numbers<[1], [0], [0], [1], [0, 0, 1, 1], [], []>} : vector<2x32xf32>, vector<32x128xf32>, vector<2x128xf32> -> vector<2x128xf32>
    %106 = arith.addf %104, %105 : vector<2x128xf32>
    %107 = arith.negf %106 : vector<2x128xf32>
    %108 = math.exp %107 : vector<2x128xf32>
    %cst_26 = arith.constant 1.000000e+00 : f32
    %109 = vector.broadcast %cst_26 : f32 to vector<2x128xf32>
    %110 = arith.addf %109, %108 : vector<2x128xf32>
    %111 = arith.divf %109, %110 : vector<2x128xf32>
    %112 = math.tanh %106 : vector<2x128xf32>
    %113 = vector.extract_strided_slice %111 {offsets = [0, 0], sizes = [2, 32], strides = [1, 1]} : vector<2x128xf32> to vector<2x32xf32>
    %114 = vector.extract_strided_slice %111 {offsets = [0, 32], sizes = [2, 32], strides = [1, 1]} : vector<2x128xf32> to vector<2x32xf32>
    %115 = vector.extract_strided_slice %112 {offsets = [0, 64], sizes = [2, 32], strides = [1, 1]} : vector<2x128xf32> to vector<2x32xf32>
    %116 = vector.extract_strided_slice %111 {offsets = [0, 96], sizes = [2, 32], strides = [1, 1]} : vector<2x128xf32> to vector<2x32xf32>
    %117 = arith.mulf %114, %100 : vector<2x32xf32>
    %118 = arith.mulf %113, %115 : vector<2x32xf32>
    %119 = arith.addf %117, %118 : vector<2x32xf32>
    %120 = math.tanh %119 : vector<2x32xf32>
    %121 = arith.mulf %116, %120 : vector<2x32xf32>
    %c10 = arith.constant 10 : index
    %c0_27 = arith.constant 0 : index
    %122 = vector.load %arg10[%c10, %c0_27] : memref<16x32xf32, #tpu.memory_space<vmem>>, vector<2x32xf32>
    tpu.vector_store %arg10[%c10, %c0_27], %121 {strides = array<i32>} : memref<16x32xf32, #tpu.memory_space<vmem>>, vector<2x32xf32>,
    %123 = vector.extract_strided_slice %6 {offsets = [12, 0], sizes = [2, 128], strides = [1, 1]} : vector<16x128xf32> to vector<2x128xf32>
    %cst_28 = arith.constant dense<0.000000e+00> : vector<2x128xf32>
    %124 = tpu.matmul %121, %1, %cst_28 {dimension_numbers = #tpu.dot_dimension_numbers<[1], [0], [0], [1], [0, 0, 1, 1], [], []>} : vector<2x32xf32>, vector<32x128xf32>, vector<2x128xf32> -> vector<2x128xf32>
    %125 = arith.addf %123, %124 : vector<2x128xf32>
    %126 = arith.negf %125 : vector<2x128xf32>
    %127 = math.exp %126 : vector<2x128xf32>
    %cst_29 = arith.constant 1.000000e+00 : f32
    %128 = vector.broadcast %cst_29 : f32 to vector<2x128xf32>
    %129 = arith.addf %128, %127 : vector<2x128xf32>
    %130 = arith.divf %128, %129 : vector<2x128xf32>
    %131 = math.tanh %125 : vector<2x128xf32>
    %132 = vector.extract_strided_slice %130 {offsets = [0, 0], sizes = [2, 32], strides = [1, 1]} : vector<2x128xf32> to vector<2x32xf32>
    %133 = vector.extract_strided_slice %130 {offsets = [0, 32], sizes = [2, 32], strides = [1, 1]} : vector<2x128xf32> to vector<2x32xf32>
    %134 = vector.extract_strided_slice %131 {offsets = [0, 64], sizes = [2, 32], strides = [1, 1]} : vector<2x128xf32> to vector<2x32xf32>
    %135 = vector.extract_strided_slice %130 {offsets = [0, 96], sizes = [2, 32], strides = [1, 1]} : vector<2x128xf32> to vector<2x32xf32>
    %136 = arith.mulf %133, %119 : vector<2x32xf32>
    %137 = arith.mulf %132, %134 : vector<2x32xf32>
    %138 = arith.addf %136, %137 : vector<2x32xf32>
    %139 = math.tanh %138 : vector<2x32xf32>
    %140 = arith.mulf %135, %139 : vector<2x32xf32>
    %c12 = arith.constant 12 : index
    %c0_30 = arith.constant 0 : index
    %141 = vector.load %arg10[%c12, %c0_30] : memref<16x32xf32, #tpu.memory_space<vmem>>, vector<2x32xf32>
    tpu.vector_store %arg10[%c12, %c0_30], %140 {strides = array<i32>} : memref<16x32xf32, #tpu.memory_space<vmem>>, vector<2x32xf32>,
    %142 = vector.extract_strided_slice %6 {offsets = [14, 0], sizes = [2, 128], strides = [1, 1]} : vector<16x128xf32> to vector<2x128xf32>
    %cst_31 = arith.constant dense<0.000000e+00> : vector<2x128xf32>
    %143 = tpu.matmul %140, %1, %cst_31 {dimension_numbers = #tpu.dot_dimension_numbers<[1], [0], [0], [1], [0, 0, 1, 1], [], []>} : vector<2x32xf32>, vector<32x128xf32>, vector<2x128xf32> -> vector<2x128xf32>
    %144 = arith.addf %142, %143 : vector<2x128xf32>
    %145 = arith.negf %144 : vector<2x128xf32>
    %146 = math.exp %145 : vector<2x128xf32>
    %cst_32 = arith.constant 1.000000e+00 : f32
    %147 = vector.broadcast %cst_32 : f32 to vector<2x128xf32>
    %148 = arith.addf %147, %146 : vector<2x128xf32>
    %149 = arith.divf %147, %148 : vector<2x128xf32>
    %150 = math.tanh %144 : vector<2x128xf32>
    %151 = vector.extract_strided_slice %149 {offsets = [0, 0], sizes = [2, 32], strides = [1, 1]} : vector<2x128xf32> to vector<2x32xf32>
    %152 = vector.extract_strided_slice %149 {offsets = [0, 32], sizes = [2, 32], strides = [1, 1]} : vector<2x128xf32> to vector<2x32xf32>
    %153 = vector.extract_strided_slice %150 {offsets = [0, 64], sizes = [2, 32], strides = [1, 1]} : vector<2x128xf32> to vector<2x32xf32>
    %154 = vector.extract_strided_slice %149 {offsets = [0, 96], sizes = [2, 32], strides = [1, 1]} : vector<2x128xf32> to vector<2x32xf32>
    %155 = arith.mulf %152, %138 : vector<2x32xf32>
    %156 = arith.mulf %151, %153 : vector<2x32xf32>
    %157 = arith.addf %155, %156 : vector<2x32xf32>
    %158 = math.tanh %157 : vector<2x32xf32>
    %159 = arith.mulf %154, %158 : vector<2x32xf32>
    %c14 = arith.constant 14 : index
    %c0_33 = arith.constant 0 : index
    %160 = vector.load %arg10[%c14, %c0_33] : memref<16x32xf32, #tpu.memory_space<vmem>>, vector<2x32xf32>
    tpu.vector_store %arg10[%c14, %c0_33], %159 {strides = array<i32>} : memref<16x32xf32, #tpu.memory_space<vmem>>, vector<2x32xf32>,
    %c0_34 = arith.constant 0 : index
    %c0_35 = arith.constant 0 : index
    %161 = vector.load %arg4[%c0_34, %c0_35] : memref<32x128xf32, #tpu.memory_space<vmem>>, vector<32x128xf32>
    %c0_36 = arith.constant 0 : index
    %c0_37 = arith.constant 0 : index
    %162 = vector.load %arg5[%c0_36, %c0_37] : memref<32x128xf32, #tpu.memory_space<vmem>>, vector<32x128xf32>
    %c0_38 = arith.constant 0 : index
    %c0_39 = arith.constant 0 : index
    %163 = vector.load %arg6[%c0_38, %c0_39] : memref<1x128xf32, #tpu.memory_space<vmem>>, vector<1x128xf32>
    %c0_40 = arith.constant 0 : index
    %c0_41 = arith.constant 0 : index
    %164 = vector.load %arg10[%c0_40, %c0_41] : memref<16x32xf32, #tpu.memory_space<vmem>>, vector<16x32xf32>
    %cst_42 = arith.constant dense<0.000000e+00> : vector<16x128xf32>
    %165 = tpu.matmul %164, %161, %cst_42 {dimension_numbers = #tpu.dot_dimension_numbers<[1], [0], [0], [1], [0, 0, 1, 1], [], []>} : vector<16x32xf32>, vector<32x128xf32>, vector<16x128xf32> -> vector<16x128xf32>
    %166 = vector.broadcast %163 : vector<1x128xf32> to vector<16x128xf32>
    %167 = arith.addf %165, %166 : vector<16x128xf32>
    %cst_43 = arith.constant 0.000000e+00 : f32
    %168 = vector.broadcast %cst_43 : f32 to vector<2x32xf32>
    %cst_44 = arith.constant 0.000000e+00 : f32
    %169 = vector.broadcast %cst_44 : f32 to vector<2x32xf32>
    %170 = vector.extract_strided_slice %167 {offsets = [0, 0], sizes = [2, 128], strides = [1, 1]} : vector<16x128xf32> to vector<2x128xf32>
    %cst_45 = arith.constant dense<0.000000e+00> : vector<2x128xf32>
    %171 = tpu.matmul %168, %162, %cst_45 {dimension_numbers = #tpu.dot_dimension_numbers<[1], [0], [0], [1], [0, 0, 1, 1], [], []>} : vector<2x32xf32>, vector<32x128xf32>, vector<2x128xf32> -> vector<2x128xf32>
    %172 = arith.addf %170, %171 : vector<2x128xf32>
    %173 = arith.negf %172 : vector<2x128xf32>
    %174 = math.exp %173 : vector<2x128xf32>
    %cst_46 = arith.constant 1.000000e+00 : f32
    %175 = vector.broadcast %cst_46 : f32 to vector<2x128xf32>
    %176 = arith.addf %175, %174 : vector<2x128xf32>
    %177 = arith.divf %175, %176 : vector<2x128xf32>
    %178 = math.tanh %172 : vector<2x128xf32>
    %179 = vector.extract_strided_slice %177 {offsets = [0, 0], sizes = [2, 32], strides = [1, 1]} : vector<2x128xf32> to vector<2x32xf32>
    %180 = vector.extract_strided_slice %177 {offsets = [0, 32], sizes = [2, 32], strides = [1, 1]} : vector<2x128xf32> to vector<2x32xf32>
    %181 = vector.extract_strided_slice %178 {offsets = [0, 64], sizes = [2, 32], strides = [1, 1]} : vector<2x128xf32> to vector<2x32xf32>
    %182 = vector.extract_strided_slice %177 {offsets = [0, 96], sizes = [2, 32], strides = [1, 1]} : vector<2x128xf32> to vector<2x32xf32>
    %183 = arith.mulf %180, %169 : vector<2x32xf32>
    %184 = arith.mulf %179, %181 : vector<2x32xf32>
    %185 = arith.addf %183, %184 : vector<2x32xf32>
    %186 = math.tanh %185 : vector<2x32xf32>
    %187 = arith.mulf %182, %186 : vector<2x32xf32>
    %188 = vector.extract_strided_slice %167 {offsets = [2, 0], sizes = [2, 128], strides = [1, 1]} : vector<16x128xf32> to vector<2x128xf32>
    %cst_47 = arith.constant dense<0.000000e+00> : vector<2x128xf32>
    %189 = tpu.matmul %187, %162, %cst_47 {dimension_numbers = #tpu.dot_dimension_numbers<[1], [0], [0], [1], [0, 0, 1, 1], [], []>} : vector<2x32xf32>, vector<32x128xf32>, vector<2x128xf32> -> vector<2x128xf32>
    %190 = arith.addf %188, %189 : vector<2x128xf32>
    %191 = arith.negf %190 : vector<2x128xf32>
    %192 = math.exp %191 : vector<2x128xf32>
    %cst_48 = arith.constant 1.000000e+00 : f32
    %193 = vector.broadcast %cst_48 : f32 to vector<2x128xf32>
    %194 = arith.addf %193, %192 : vector<2x128xf32>
    %195 = arith.divf %193, %194 : vector<2x128xf32>
    %196 = math.tanh %190 : vector<2x128xf32>
    %197 = vector.extract_strided_slice %195 {offsets = [0, 0], sizes = [2, 32], strides = [1, 1]} : vector<2x128xf32> to vector<2x32xf32>
    %198 = vector.extract_strided_slice %195 {offsets = [0, 32], sizes = [2, 32], strides = [1, 1]} : vector<2x128xf32> to vector<2x32xf32>
    %199 = vector.extract_strided_slice %196 {offsets = [0, 64], sizes = [2, 32], strides = [1, 1]} : vector<2x128xf32> to vector<2x32xf32>
    %200 = vector.extract_strided_slice %195 {offsets = [0, 96], sizes = [2, 32], strides = [1, 1]} : vector<2x128xf32> to vector<2x32xf32>
    %201 = arith.mulf %198, %185 : vector<2x32xf32>
    %202 = arith.mulf %197, %199 : vector<2x32xf32>
    %203 = arith.addf %201, %202 : vector<2x32xf32>
    %204 = math.tanh %203 : vector<2x32xf32>
    %205 = arith.mulf %200, %204 : vector<2x32xf32>
    %206 = vector.extract_strided_slice %167 {offsets = [4, 0], sizes = [2, 128], strides = [1, 1]} : vector<16x128xf32> to vector<2x128xf32>
    %cst_49 = arith.constant dense<0.000000e+00> : vector<2x128xf32>
    %207 = tpu.matmul %205, %162, %cst_49 {dimension_numbers = #tpu.dot_dimension_numbers<[1], [0], [0], [1], [0, 0, 1, 1], [], []>} : vector<2x32xf32>, vector<32x128xf32>, vector<2x128xf32> -> vector<2x128xf32>
    %208 = arith.addf %206, %207 : vector<2x128xf32>
    %209 = arith.negf %208 : vector<2x128xf32>
    %210 = math.exp %209 : vector<2x128xf32>
    %cst_50 = arith.constant 1.000000e+00 : f32
    %211 = vector.broadcast %cst_50 : f32 to vector<2x128xf32>
    %212 = arith.addf %211, %210 : vector<2x128xf32>
    %213 = arith.divf %211, %212 : vector<2x128xf32>
    %214 = math.tanh %208 : vector<2x128xf32>
    %215 = vector.extract_strided_slice %213 {offsets = [0, 0], sizes = [2, 32], strides = [1, 1]} : vector<2x128xf32> to vector<2x32xf32>
    %216 = vector.extract_strided_slice %213 {offsets = [0, 32], sizes = [2, 32], strides = [1, 1]} : vector<2x128xf32> to vector<2x32xf32>
    %217 = vector.extract_strided_slice %214 {offsets = [0, 64], sizes = [2, 32], strides = [1, 1]} : vector<2x128xf32> to vector<2x32xf32>
    %218 = vector.extract_strided_slice %213 {offsets = [0, 96], sizes = [2, 32], strides = [1, 1]} : vector<2x128xf32> to vector<2x32xf32>
    %219 = arith.mulf %216, %203 : vector<2x32xf32>
    %220 = arith.mulf %215, %217 : vector<2x32xf32>
    %221 = arith.addf %219, %220 : vector<2x32xf32>
    %222 = math.tanh %221 : vector<2x32xf32>
    %223 = arith.mulf %218, %222 : vector<2x32xf32>
    %224 = vector.extract_strided_slice %167 {offsets = [6, 0], sizes = [2, 128], strides = [1, 1]} : vector<16x128xf32> to vector<2x128xf32>
    %cst_51 = arith.constant dense<0.000000e+00> : vector<2x128xf32>
    %225 = tpu.matmul %223, %162, %cst_51 {dimension_numbers = #tpu.dot_dimension_numbers<[1], [0], [0], [1], [0, 0, 1, 1], [], []>} : vector<2x32xf32>, vector<32x128xf32>, vector<2x128xf32> -> vector<2x128xf32>
    %226 = arith.addf %224, %225 : vector<2x128xf32>
    %227 = arith.negf %226 : vector<2x128xf32>
    %228 = math.exp %227 : vector<2x128xf32>
    %cst_52 = arith.constant 1.000000e+00 : f32
    %229 = vector.broadcast %cst_52 : f32 to vector<2x128xf32>
    %230 = arith.addf %229, %228 : vector<2x128xf32>
    %231 = arith.divf %229, %230 : vector<2x128xf32>
    %232 = math.tanh %226 : vector<2x128xf32>
    %233 = vector.extract_strided_slice %231 {offsets = [0, 0], sizes = [2, 32], strides = [1, 1]} : vector<2x128xf32> to vector<2x32xf32>
    %234 = vector.extract_strided_slice %231 {offsets = [0, 32], sizes = [2, 32], strides = [1, 1]} : vector<2x128xf32> to vector<2x32xf32>
    %235 = vector.extract_strided_slice %232 {offsets = [0, 64], sizes = [2, 32], strides = [1, 1]} : vector<2x128xf32> to vector<2x32xf32>
    %236 = vector.extract_strided_slice %231 {offsets = [0, 96], sizes = [2, 32], strides = [1, 1]} : vector<2x128xf32> to vector<2x32xf32>
    %237 = arith.mulf %234, %221 : vector<2x32xf32>
    %238 = arith.mulf %233, %235 : vector<2x32xf32>
    %239 = arith.addf %237, %238 : vector<2x32xf32>
    %240 = math.tanh %239 : vector<2x32xf32>
    %241 = arith.mulf %236, %240 : vector<2x32xf32>
    %242 = vector.extract_strided_slice %167 {offsets = [8, 0], sizes = [2, 128], strides = [1, 1]} : vector<16x128xf32> to vector<2x128xf32>
    %cst_53 = arith.constant dense<0.000000e+00> : vector<2x128xf32>
    %243 = tpu.matmul %241, %162, %cst_53 {dimension_numbers = #tpu.dot_dimension_numbers<[1], [0], [0], [1], [0, 0, 1, 1], [], []>} : vector<2x32xf32>, vector<32x128xf32>, vector<2x128xf32> -> vector<2x128xf32>
    %244 = arith.addf %242, %243 : vector<2x128xf32>
    %245 = arith.negf %244 : vector<2x128xf32>
    %246 = math.exp %245 : vector<2x128xf32>
    %cst_54 = arith.constant 1.000000e+00 : f32
    %247 = vector.broadcast %cst_54 : f32 to vector<2x128xf32>
    %248 = arith.addf %247, %246 : vector<2x128xf32>
    %249 = arith.divf %247, %248 : vector<2x128xf32>
    %250 = math.tanh %244 : vector<2x128xf32>
    %251 = vector.extract_strided_slice %249 {offsets = [0, 0], sizes = [2, 32], strides = [1, 1]} : vector<2x128xf32> to vector<2x32xf32>
    %252 = vector.extract_strided_slice %249 {offsets = [0, 32], sizes = [2, 32], strides = [1, 1]} : vector<2x128xf32> to vector<2x32xf32>
    %253 = vector.extract_strided_slice %250 {offsets = [0, 64], sizes = [2, 32], strides = [1, 1]} : vector<2x128xf32> to vector<2x32xf32>
    %254 = vector.extract_strided_slice %249 {offsets = [0, 96], sizes = [2, 32], strides = [1, 1]} : vector<2x128xf32> to vector<2x32xf32>
    %255 = arith.mulf %252, %239 : vector<2x32xf32>
    %256 = arith.mulf %251, %253 : vector<2x32xf32>
    %257 = arith.addf %255, %256 : vector<2x32xf32>
    %258 = math.tanh %257 : vector<2x32xf32>
    %259 = arith.mulf %254, %258 : vector<2x32xf32>
    %260 = vector.extract_strided_slice %167 {offsets = [10, 0], sizes = [2, 128], strides = [1, 1]} : vector<16x128xf32> to vector<2x128xf32>
    %cst_55 = arith.constant dense<0.000000e+00> : vector<2x128xf32>
    %261 = tpu.matmul %259, %162, %cst_55 {dimension_numbers = #tpu.dot_dimension_numbers<[1], [0], [0], [1], [0, 0, 1, 1], [], []>} : vector<2x32xf32>, vector<32x128xf32>, vector<2x128xf32> -> vector<2x128xf32>
    %262 = arith.addf %260, %261 : vector<2x128xf32>
    %263 = arith.negf %262 : vector<2x128xf32>
    %264 = math.exp %263 : vector<2x128xf32>
    %cst_56 = arith.constant 1.000000e+00 : f32
    %265 = vector.broadcast %cst_56 : f32 to vector<2x128xf32>
    %266 = arith.addf %265, %264 : vector<2x128xf32>
    %267 = arith.divf %265, %266 : vector<2x128xf32>
    %268 = math.tanh %262 : vector<2x128xf32>
    %269 = vector.extract_strided_slice %267 {offsets = [0, 0], sizes = [2, 32], strides = [1, 1]} : vector<2x128xf32> to vector<2x32xf32>
    %270 = vector.extract_strided_slice %267 {offsets = [0, 32], sizes = [2, 32], strides = [1, 1]} : vector<2x128xf32> to vector<2x32xf32>
    %271 = vector.extract_strided_slice %268 {offsets = [0, 64], sizes = [2, 32], strides = [1, 1]} : vector<2x128xf32> to vector<2x32xf32>
    %272 = vector.extract_strided_slice %267 {offsets = [0, 96], sizes = [2, 32], strides = [1, 1]} : vector<2x128xf32> to vector<2x32xf32>
    %273 = arith.mulf %270, %257 : vector<2x32xf32>
    %274 = arith.mulf %269, %271 : vector<2x32xf32>
    %275 = arith.addf %273, %274 : vector<2x32xf32>
    %276 = math.tanh %275 : vector<2x32xf32>
    %277 = arith.mulf %272, %276 : vector<2x32xf32>
    %278 = vector.extract_strided_slice %167 {offsets = [12, 0], sizes = [2, 128], strides = [1, 1]} : vector<16x128xf32> to vector<2x128xf32>
    %cst_57 = arith.constant dense<0.000000e+00> : vector<2x128xf32>
    %279 = tpu.matmul %277, %162, %cst_57 {dimension_numbers = #tpu.dot_dimension_numbers<[1], [0], [0], [1], [0, 0, 1, 1], [], []>} : vector<2x32xf32>, vector<32x128xf32>, vector<2x128xf32> -> vector<2x128xf32>
    %280 = arith.addf %278, %279 : vector<2x128xf32>
    %281 = arith.negf %280 : vector<2x128xf32>
    %282 = math.exp %281 : vector<2x128xf32>
    %cst_58 = arith.constant 1.000000e+00 : f32
    %283 = vector.broadcast %cst_58 : f32 to vector<2x128xf32>
    %284 = arith.addf %283, %282 : vector<2x128xf32>
    %285 = arith.divf %283, %284 : vector<2x128xf32>
    %286 = math.tanh %280 : vector<2x128xf32>
    %287 = vector.extract_strided_slice %285 {offsets = [0, 0], sizes = [2, 32], strides = [1, 1]} : vector<2x128xf32> to vector<2x32xf32>
    %288 = vector.extract_strided_slice %285 {offsets = [0, 32], sizes = [2, 32], strides = [1, 1]} : vector<2x128xf32> to vector<2x32xf32>
    %289 = vector.extract_strided_slice %286 {offsets = [0, 64], sizes = [2, 32], strides = [1, 1]} : vector<2x128xf32> to vector<2x32xf32>
    %290 = vector.extract_strided_slice %285 {offsets = [0, 96], sizes = [2, 32], strides = [1, 1]} : vector<2x128xf32> to vector<2x32xf32>
    %291 = arith.mulf %288, %275 : vector<2x32xf32>
    %292 = arith.mulf %287, %289 : vector<2x32xf32>
    %293 = arith.addf %291, %292 : vector<2x32xf32>
    %294 = math.tanh %293 : vector<2x32xf32>
    %295 = arith.mulf %290, %294 : vector<2x32xf32>
    %296 = vector.extract_strided_slice %167 {offsets = [14, 0], sizes = [2, 128], strides = [1, 1]} : vector<16x128xf32> to vector<2x128xf32>
    %cst_59 = arith.constant dense<0.000000e+00> : vector<2x128xf32>
    %297 = tpu.matmul %295, %162, %cst_59 {dimension_numbers = #tpu.dot_dimension_numbers<[1], [0], [0], [1], [0, 0, 1, 1], [], []>} : vector<2x32xf32>, vector<32x128xf32>, vector<2x128xf32> -> vector<2x128xf32>
    %298 = arith.addf %296, %297 : vector<2x128xf32>
    %299 = arith.negf %298 : vector<2x128xf32>
    %300 = math.exp %299 : vector<2x128xf32>
    %cst_60 = arith.constant 1.000000e+00 : f32
    %301 = vector.broadcast %cst_60 : f32 to vector<2x128xf32>
    %302 = arith.addf %301, %300 : vector<2x128xf32>
    %303 = arith.divf %301, %302 : vector<2x128xf32>
    %304 = math.tanh %298 : vector<2x128xf32>
    %305 = vector.extract_strided_slice %303 {offsets = [0, 0], sizes = [2, 32], strides = [1, 1]} : vector<2x128xf32> to vector<2x32xf32>
    %306 = vector.extract_strided_slice %303 {offsets = [0, 32], sizes = [2, 32], strides = [1, 1]} : vector<2x128xf32> to vector<2x32xf32>
    %307 = vector.extract_strided_slice %304 {offsets = [0, 64], sizes = [2, 32], strides = [1, 1]} : vector<2x128xf32> to vector<2x32xf32>
    %308 = vector.extract_strided_slice %303 {offsets = [0, 96], sizes = [2, 32], strides = [1, 1]} : vector<2x128xf32> to vector<2x32xf32>
    %309 = arith.mulf %306, %293 : vector<2x32xf32>
    %310 = arith.mulf %305, %307 : vector<2x32xf32>
    %311 = arith.addf %309, %310 : vector<2x32xf32>
    %312 = math.tanh %311 : vector<2x32xf32>
    %313 = arith.mulf %308, %312 : vector<2x32xf32>
    %c0_61 = arith.constant 0 : index
    %c0_62 = arith.constant 0 : index
    %314 = vector.load %arg7[%c0_61, %c0_62] : memref<32x2xf32, #tpu.memory_space<vmem>>, vector<32x2xf32>
    %cst_63 = arith.constant dense<0.000000e+00> : vector<2x2xf32>
    %315 = tpu.matmul %313, %314, %cst_63 {dimension_numbers = #tpu.dot_dimension_numbers<[1], [0], [0], [1], [0, 0, 1, 1], [], []>} : vector<2x32xf32>, vector<32x2xf32>, vector<2x2xf32> -> vector<2x2xf32>
    %c0_64 = arith.constant 0 : index
    %c0_65 = arith.constant 0 : index
    %316 = vector.load %arg8[%c0_64, %c0_65] : memref<1x2xf32, #tpu.memory_space<vmem>>, vector<1x2xf32>
    %317 = vector.broadcast %316 : vector<1x2xf32> to vector<2x2xf32>
    %318 = arith.addf %315, %317 : vector<2x2xf32>
    %c0_66 = arith.constant 0 : index
    %c0_67 = arith.constant 0 : index
    %319 = vector.load %arg9[%c0_66, %c0_67] : memref<2x2xf32, #tpu.memory_space<vmem>>, vector<2x2xf32>
    tpu.vector_store %arg9[%c0_66, %c0_67], %318 {strides = array<i32>} : memref<2x2xf32, #tpu.memory_space<vmem>>, vector<2x2xf32>,
    return
  }
}

</mosaic_0001>

<bundles_post_ra>
// kernel: tpu_custom_call.1
= control target key start
LH: loop header
LB: loop body
LE: loop exit
PB: predicated region body
PF: predicated region fallthrough
CT: control target
= control target key end

     0   :  { %14 = vsyncpa [#allocation4], 0  ;;  %s2025_s0 = inlined_call_operand.hbm [shape: f32[16,34], index: 0, kind: input, shape index: {}]   ;;  %s2026_s1 = inlined_call_operand.hbm [shape: f32[34,128], index: 1, kind: input, shape index: {}]   ;;  %s2027_s2 = inlined_call_operand.vmem [shape: f32[32,128], index: 2, kind: input, shape index: {}]   ;;  %s2028_s3 = inlined_call_operand.vmem [shape: f32[1,128], index: 3, kind: input, shape index: {}]   ;;  %s2029_s4 = inlined_call_operand.hbm [shape: f32[32,128], index: 4, kind: input, shape index: {}]   ;;  %s2030_s5 = inlined_call_operand.hbm [shape: f32[32,128], index: 5, kind: input, shape index: {}]   ;;  %s2031_s6 = inlined_call_operand.vmem [shape: f32[1,128], index: 6, kind: input, shape index: {}]   ;;  %s2032_s7 = inlined_call_operand.vmem [shape: f32[32,2], index: 7, kind: input, shape index: {}]   ;;  %s2033_s8 = inlined_call_operand.vmem [shape: f32[1,2], index: 8, kind: input, shape index: {}]   ;;  %s2034_s9 = inlined_call_operand.hbm [shape: f32[2,2], index: 9, kind: output, shape index: {}]  }
   0x1   :  { %15 = vsyncpa [#allocation7], 0 }
   0x2   :  { %16 = vsyncpa [#allocation10], 0 }
   0x3   :  { %17 = vsyncpa [#allocation5], 0  ;;  %s35_s11 = sshll.u32 %s2026_s1, 4  ;;  %s1671_s12 = smov [#allocation6]   ;;  %s36_s11 = int_to_ptr.hbm [resolvable:$true] %s35_s11 }
   0x4   :  { %s37_s13 = sshll.u32 %s1671_s12, 4  ;;  %s22_s16 = sshll.u32 %s2025_s0, 4  ;;  %s38_s13 = int_to_ptr.vmem [resolvable:$true] %s37_s13  ;;  %s23_s16 = int_to_ptr.hbm [resolvable:$true] %s22_s16 }
   0x5   :  { %s1672_s17 = smov 128   ;;  %s1673_s18 = smov 8  }
   0x6   :  { %43 = dma.hbm_to_vmem [thread:$0]  %s36_s11, 640, %s38_s13, [#allocation7], %s1672_s17, %s1672_s17, %s1673_s18  }
   0x7   :  { %s1674_s19 = smov [#allocation3]   ;;  %s52_s23 = sshll.u32 %s2029_s4, 4  ;;  %s53_s23 = int_to_ptr.hbm [resolvable:$true] %s52_s23 }
   0x8   :  { %s24_s20 = sshll.u32 %s1674_s19, 4  ;;  %s65_s25 = sshll.u32 %s2030_s5, 4  ;;  %s25_s20 = int_to_ptr.vmem [resolvable:$true] %s24_s20  ;;  %s66_s25 = int_to_ptr.hbm [resolvable:$true] %s65_s25 }
   0x9   :  { %30 = dma.hbm_to_vmem [thread:$0]  %s23_s16, 256, %s25_s20, [#allocation4], %s1672_s17, %s1672_s17, %s1673_s18  }
   0xa   :  { %s1675_s26 = smov [#allocation8]   ;;  %s1676_s0 = smov [#allocation9]  }
   0xb   :  { %s54_s27 = sshll.u32 %s1675_s26, 4  ;;  %s67_s28 = sshll.u32 %s1676_s0, 4  ;;  %s55_s27 = int_to_ptr.vmem [resolvable:$true] %s54_s27  ;;  %s68_s28 = int_to_ptr.vmem [resolvable:$true] %s67_s28 }
   0xc   :  { %60 = dma.hbm_to_vmem [thread:$0]  %s53_s23, 512, %s55_s27, [#allocation7], %s1672_s17, %s1672_s17, %s1673_s18  }
   0xd   :  { %73 = dma.hbm_to_vmem [thread:$0]  %s66_s25, 512, %s68_s28, [#allocation10], %s1672_s17, %s1672_s17, %s1673_s18  }
   0xe   :  { %1663 = dma.done.wait [#allocation4], 256  }
   0xf   :  { %1664 = vsyncadd [#allocation4], 4294967040 }
  0x10   :  { %1665 = dma.done.wait [#allocation7], 1152  }
  0x11   :  { %1666 = vsyncadd [#allocation7], 4294966144 }
  0x12   :  { %1667 = dma.done.wait [#allocation10], 512  }
  0x13   :  { %1668 = vsyncadd [#allocation10], 4294966784  ;;  %vm118_vm0 = vcmask 1041408   ;;  %v100_v0 = vld [vmem:[#allocation6 + $0x20] sm:$0x3]  ;;  %v99_v1 = vld [vmem:[#allocation6 + $0x18] sm:$0xff] }
  0x14   :  { %1366 = vmatpush.msk.msra.mxu0 %vm118_vm0, %v100_v0  ;;  %v1746_v2 = vld [vmem:[%s2027_s2 + $0x18] sm:$0xff]  ;;  %v1751_v3 = vld [vmem:[%s2027_s2 + $0x10] sm:$0xff]  ;;  %v1758_v5 = vld [vmem:[%s2027_s2 + $0x8] sm:$0xff]  ;;  %vm111_vm1 = vcmask 277504   ;;  %v1677_v10 = vmov 0.0   ;;  %s1678_s15 = smov 64  }
  0x15   :  { %v98_v4 = vld [vmem:[#allocation6 + $0x10] sm:$0xff]  ;;  %161 = vmatpush.msra.mxu1 %v1746_v2  ;;  %227 = vmatpush.msra.mxu2 %v1746_v2  ;;  %v97_v6 = vld [vmem:[#allocation6 + $0x8] sm:$0xff]  ;;  %v1766_v7 = vld [vmem:[%s2027_s2] sm:$0xff]  ;;  %vm211_vm6 = vcmask 254976   ;;  %vm145_vm7 = vcmask 261120   ;;  %s1680_s26 = smov [#allocation11]  }
  0x16   :  { %134 = vmatpush.msra.mxu0 %v99_v1  ;;  %302 = vmatpush.msra.mxu3 %v1746_v2  ;;  %v96_v8 = vld [vmem:[#allocation6] sm:$0xff]  ;;  %v106_v9 = vld [vmem:[#allocation3] sm:$0xff]  ;;  %s1352_s27 = sshll.u32 %s1680_s26, 4  ;;  %s1353_s27 = int_to_ptr.vmem [resolvable:$true] %s1352_s27 }
  0x17   :  { %162 = vmatpush.msra.mxu1 %v1751_v3  ;;  %228 = vmatpush.msra.mxu2 %v1751_v3  ;;  %v1796_v11 = vld [vmem:[%s2028_s3] ss:$0 sm:$0xff]  ;;  %s1679_s3 = smov 32  }
  0x18   :  { %135 = vmatpush.msra.mxu0 %v98_v4  ;;  %303 = vmatpush.msra.mxu3 %v1751_v3 }
  0x19   :  { %163 = vmatpush.msra.mxu1 %v1758_v5  ;;  %229 = vmatpush.msra.mxu2 %v1758_v5 }
  0x1a   :  { %136 = vmatpush.msra.mxu0 %v97_v6  ;;  %304 = vmatpush.msra.mxu3 %v1758_v5 }
  0x1b   :  { %164 = vmatpush.msra.mxu1 %v1766_v7  ;;  %230 = vmatpush.msra.mxu2 %v1766_v7 }
  0x1c   :  { %137 = vmatpush.msra.mxu0 %v96_v8  ;;  %165 = vmatmul.f32.vlgmr.msra.gmra.mxu1 %v1677_v10 }
  0x1d   :  { %1367 = vmatmul.msk.f32.vlgmr.msra.gmra.mxu0 %vm111_vm1, %v106_v9  ;;  %305 = vmatpush.msra.mxu3 %v1766_v7 }
  0x1e   :  { %377 = vmatpush.msrb.mxu1 %v1746_v2  ;;  %452 = vmatpush.msrb.mxu2 %v1746_v2 }
  0x1f   :  { %520 = vmatpush.msrb.mxu3 %v1746_v2 }
  0x20   :  { %378 = vmatpush.msrb.mxu1 %v1751_v3  ;;  %453 = vmatpush.msrb.mxu2 %v1751_v3 }
  0x21   :  { %521 = vmatpush.msrb.mxu3 %v1751_v3 }
  0x22   :  { %379 = vmatpush.msrb.mxu1 %v1758_v5  ;;  %454 = vmatpush.msrb.mxu2 %v1758_v5 }
  0x23   :  { %522 = vmatpush.msrb.mxu3 %v1758_v5 }
  0x24   :  { %380 = vmatpush.msrb.mxu1 %v1766_v7  ;;  %455 = vmatpush.msrb.mxu2 %v1766_v7 }
  0x25   :  { %523 = vmatpush.msrb.mxu3 %v1766_v7 }
  0x26   :  { %594 = vmatpush.msra.mxu1 %v1746_v2 }
  0x28   :  { %595 = vmatpush.msra.mxu1 %v1751_v3 }
  0x2a   :  { %596 = vmatpush.msra.mxu1 %v1758_v5 }
  0x2c   :  { %597 = vmatpush.msra.mxu1 %v1766_v7 }
  0x99   :  { %v166_v13 = vpop.f32.mrf.mxu1 }
  0x9a   :  { %v139_v12 = vpop.f32.mrf.mxu0 }
  0x9b   :  { %v1799_v14 = vadd.f32 %v1796_v11, %v139_v12 }
  0x9d   :  { %v169_v15 = vadd.f32 %v166_v13, %v1799_v14 }
  0x9f   :  { %1415 = vtanh.f32 %v169_v15  ;;  %v1369_v17 = vmul.f32 -1.442695, %v169_v15 }
  0xa1   :  { %1417 = vpow2.f32 %v1369_v17 }
  0xa5   :  { %v1416_v16 = vpop.eup %1415 }
  0xa6   :  { %192 = vrot.lane.b32.xlu0 %v1416_v16, %s1678_s15 }
  0xa7   :  { %v1418_v18 = vpop.eup %1417 }
  0xa8   :  { %v173_v19 = vadd.f32 1.0, %v1418_v18 }
  0xaa   :  { %1419 = vrcp.f32 %v173_v19  ;;  %v185_v25 = vand.u32 2147483648, %v173_v19  ;;  %vm179_vm3 = vweird.f32 %v173_v19  ;;  %v183_v26 = vand.u32 2147483647, %v173_v19 }
  0xac   :  { %v186_v28 = vor.u32 1.1754944e-38, %v185_v25  ;;  %vm184_vm5 = vcmp.eq.f32.partialorder %v183_v26, 8.507059e+37 }
  0xb0   :  { %v1420_v20 = vpop.eup %1419 }
  0xb1   :  { %v175_v21 = vmul.f32 %v1420_v20, %v173_v19  ;;  %vm180_vm2 = vweird.f32 %v1420_v20 }
  0xb2   :  { %vm181_vm4 = vmor %vm179_vm3, %vm180_vm2 }
  0xb3   :  { %v176_v22 = vsub.f32 1.0, %v175_v21 }
  0xb5   :  { %v177_v23 = vmul.f32 %v1420_v20, %v176_v22 }
  0xb7   :  { %v178_v24 = vadd.f32 %v1420_v20, %v177_v23 }
  0xb9   :  { %v182_v27 = vsel %vm181_vm4, %v1420_v20, %v178_v24 }
  0xba   :  { %v187_v30 = vsel %vm184_vm5, %v186_v28, %v182_v27 }
  0xbb   :  { %v190_v32 = vmul.f32 0.0, %v187_v30 }
 0x118   :  { %v193_v29 = vpop.permute.xlu0 %192 }
 0x119   :  { %v195_v31 = vmul.f32 %v193_v29, %v187_v30 }
 0x11b   :  { %197 = vrot.lane.b32.xlu0 %v195_v31, %s1679_s3 }
 0x18d   :  { %v198_v33 = vpop.permute.xlu0 %197 }
 0x18e   :  { %v200_v34 = vadd.f32 %v198_v33, %v190_v32 }
 0x190   :  { %1421 = vtanh.f32 %v200_v34  ;;  %v260_v58 = vrot.slane %v200_v34, 6 }
 0x196   :  { %v1422_v35 = vpop.eup %1421 }
 0x197   :  { %203 = vrot.lane.b32.xlu1 %v1422_v35, %s1678_s15 }
 0x209   :  { %v204_v36 = vpop.permute.xlu1 %203 }
 0x20a   :  { %v206_v37 = vmul.f32 %v204_v36, %v187_v30 }
 0x20c   :  { %208 = vrot.lane.b32.xlu1 %v206_v37, %s1679_s3 }
 0x27e   :  { %v209_v38 = vpop.permute.xlu1 %208 }
 0x27f   :  { %212 = vst.msk [vmem:[#allocation2] sm:$0x3] %vm211_vm6, %v209_v38  ;;  %1370 = vmatmul.msk.f32.vlgmr.msra.gmra.mxu2 %vm145_vm7, %v209_v38 }
 0x280   :  { %668 = vmatpush.msra.mxu2 %v1746_v2 }
 0x282   :  { %669 = vmatpush.msra.mxu2 %v1751_v3 }
 0x284   :  { %670 = vmatpush.msra.mxu2 %v1758_v5 }
 0x286   :  { %671 = vmatpush.msra.mxu2 %v1766_v7 }
 0x302   :  { %v232_v39 = vpop.f32.mrf.mxu2 }
 0x303   :  { %v236_v40 = vrot.slane %v232_v39, 6 }
 0x305   :  { %v238_v41 = vadd.f32 %v236_v40, %v1799_v14 }
 0x307   :  { %1423 = vtanh.f32 %v238_v41  ;;  %v1371_v43 = vmul.f32 -1.442695, %v238_v41 }
 0x309   :  { %1425 = vpow2.f32 %v1371_v43 }
 0x30d   :  { %v1424_v42 = vpop.eup %1423 }
 0x30e   :  { %264 = vrot.lane.b32.xlu2 %v1424_v42, %s1678_s15 }
 0x30f   :  { %v1426_v44 = vpop.eup %1425 }
 0x310   :  { %v242_v45 = vadd.f32 1.0, %v1426_v44 }
 0x312   :  { %1427 = vrcp.f32 %v242_v45  ;;  %v254_v51 = vand.u32 2147483648, %v242_v45  ;;  %vm248_vm9 = vweird.f32 %v242_v45  ;;  %v252_v52 = vand.u32 2147483647, %v242_v45 }
 0x314   :  { %v255_v54 = vor.u32 1.1754944e-38, %v254_v51  ;;  %vm253_vm11 = vcmp.eq.f32.partialorder %v252_v52, 8.507059e+37 }
 0x318   :  { %v1428_v46 = vpop.eup %1427 }
 0x319   :  { %v244_v47 = vmul.f32 %v1428_v46, %v242_v45  ;;  %vm249_vm8 = vweird.f32 %v1428_v46 }
 0x31a   :  { %vm250_vm10 = vmor %vm248_vm9, %vm249_vm8 }
 0x31b   :  { %v245_v48 = vsub.f32 1.0, %v244_v47 }
 0x31d   :  { %v246_v49 = vmul.f32 %v1428_v46, %v245_v48 }
 0x31f   :  { %v247_v50 = vadd.f32 %v1428_v46, %v246_v49 }
 0x321   :  { %v251_v53 = vsel %vm250_vm10, %v1428_v46, %v247_v50  ;;  %vm283_vm10 = vcmask 257026  }
 0x322   :  { %v256_v56 = vsel %vm253_vm11, %v255_v54, %v251_v53  ;;  %vm358_vm11 = vcmask 259076  }
 0x323   :  { %v262_v59 = vmul.f32 %v260_v58, %v256_v56 }
 0x368   :  { %v265_v55 = vpop.permute.xlu2 %264 }
 0x369   :  { %v267_v57 = vmul.f32 %v265_v55, %v256_v56 }
 0x36b   :  { %269 = vrot.lane.b32.xlu2 %v267_v57, %s1679_s3 }
 0x3c5   :  { %v270_v60 = vpop.permute.xlu2 %269 }
 0x3c6   :  { %v272_v61 = vadd.f32 %v270_v60, %v262_v59  ;;  %v107_v60 = vld [vmem:[#allocation3 + $0x8] sm:$0xff] }
 0x3c7   :  { %1368 = vmatmul.msk.f32.gmra.mxu0 %vm111_vm1, %v107_v60 }
 0x3c8   :  { %1429 = vtanh.f32 %v272_v61  ;;  %v335_v25 = vrot.slane %v272_v61, 6 }
 0x3ce   :  { %v1430_v62 = vpop.eup %1429 }
 0x3cf   :  { %275 = vrot.lane.b32.xlu0 %v1430_v62, %s1678_s15 }
 0x441   :  { %v276_v63 = vpop.permute.xlu0 %275 }
 0x442   :  { %v1816_v0 = vmul.f32 %v276_v63, %v256_v56 }
 0x444   :  { %v285_v1 = vrot.slane %v1816_v0, 2  ;;  %v142_v62 = vpop.f32.mrf.mxu0 }
 0x445   :  { %v1838_v63 = vadd.f32 %v1796_v11, %v142_v62 }
 0x446   :  { %286 = vrot.lane.b32.xlu1 %v285_v1, %s1679_s3 }
 0x4b8   :  { %v287_v2 = vpop.permute.xlu1 %286 }
 0x4b9   :  { %1372 = vmatmul.msk.f32.vlgmr.msra.gmra.mxu3 %vm145_vm7, %v287_v2 }
 0x53c   :  { %v307_v3 = vpop.f32.mrf.mxu3 }
 0x53d   :  { %v311_v4 = vrot.slane %v307_v3, 4 }
 0x53f   :  { %v313_v5 = vadd.f32 %v311_v4, %v1799_v14 }
 0x541   :  { %1431 = vtanh.f32 %v313_v5  ;;  %v1373_v7 = vmul.f32 -1.442695, %v313_v5 }
 0x543   :  { %1433 = vpow2.f32 %v1373_v7 }
 0x547   :  { %v1432_v6 = vpop.eup %1431 }
 0x548   :  { %339 = vrot.lane.b32.xlu2 %v1432_v6, %s1678_s15 }
 0x549   :  { %v1434_v8 = vpop.eup %1433 }
 0x54a   :  { %v317_v9 = vadd.f32 1.0, %v1434_v8 }
 0x54c   :  { %1435 = vrcp.f32 %v317_v9  ;;  %v329_v18 = vand.u32 2147483648, %v317_v9  ;;  %vm323_vm13 = vweird.f32 %v317_v9  ;;  %v327_v19 = vand.u32 2147483647, %v317_v9 }
 0x54e   :  { %v330_v21 = vor.u32 1.1754944e-38, %v329_v18  ;;  %vm328_vm15 = vcmp.eq.f32.partialorder %v327_v19, 8.507059e+37 }
 0x552   :  { %v1436_v12 = vpop.eup %1435 }
 0x553   :  { %v319_v13 = vmul.f32 %v1436_v12, %v317_v9  ;;  %vm324_vm12 = vweird.f32 %v1436_v12 }
 0x554   :  { %vm325_vm14 = vmor %vm323_vm13, %vm324_vm12  ;;  %vm433_vm12 = vcmask 261126  }
 0x555   :  { %v320_v15 = vsub.f32 1.0, %v319_v13 }
 0x557   :  { %v321_v16 = vmul.f32 %v1436_v12, %v320_v15 }
 0x559   :  { %v322_v17 = vadd.f32 %v1436_v12, %v321_v16 }
 0x55b   :  { %v326_v20 = vsel %vm325_vm14, %v1436_v12, %v322_v17 }
 0x55c   :  { %v331_v23 = vsel %vm328_vm15, %v330_v21, %v326_v20 }
 0x55d   :  { %v337_v26 = vmul.f32 %v335_v25, %v331_v23 }
 0x5a2   :  { %v340_v22 = vpop.permute.xlu2 %339 }
 0x5a3   :  { %v342_v24 = vmul.f32 %v340_v22, %v331_v23 }
 0x5a5   :  { %344 = vrot.lane.b32.xlu0 %v342_v24, %s1679_s3 }
 0x617   :  { %v345_v27 = vpop.permute.xlu0 %344 }
 0x618   :  { %v347_v28 = vadd.f32 %v345_v27, %v337_v26 }
 0x61a   :  { %1437 = vtanh.f32 %v347_v28  ;;  %v410_v52 = vrot.slane %v347_v28, 6 }
 0x620   :  { %v1438_v29 = vpop.eup %1437 }
 0x621   :  { %350 = vrot.lane.b32.xlu1 %v1438_v29, %s1678_s15  ;;  %v728_v29 = vld [vmem:[#allocation8 + $0x18] sm:$0xff] }
 0x622   :  { %757 = vmatpush.msra.mxu3 %v728_v29 }
 0x693   :  { %v351_v30 = vpop.permute.xlu1 %350 }
 0x694   :  { %v1825_v31 = vmul.f32 %v351_v30, %v331_v23  ;;  %v1855_v30 = vld [vmem:[#allocation9 + $0x18] sm:$0xff] }
 0x695   :  { %780 = vmatpush.msrb.mxu0 %v1855_v30 }
 0x696   :  { %v360_v32 = vrot.slane %v1825_v31, 4 }
 0x698   :  { %361 = vrot.lane.b32.xlu2 %v360_v32, %s1679_s3  ;;  %v727_v32 = vld [vmem:[#allocation8 + $0x10] sm:$0xff] }
 0x699   :  { %758 = vmatpush.msra.mxu3 %v727_v32 }
 0x6f2   :  { %v362_v33 = vpop.permute.xlu2 %361 }
 0x6f3   :  { %1374 = vmatmul.msk.f32.vlgmr.msrb.gmra.mxu1 %vm145_vm7, %v362_v33  ;;  %v1858_v33 = vld [vmem:[#allocation9 + $0x10] sm:$0xff] }
 0x6f4   :  { %843 = vmatpush.msrb.mxu1 %v1855_v30  ;;  %781 = vmatpush.msrb.mxu0 %v1858_v33 }
 0x6f6   :  { %844 = vmatpush.msrb.mxu1 %v1858_v33 }
 0x770   :  { %v382_v34 = vpop.f32.mrf.mxu1 }
 0x771   :  { %v386_v35 = vrot.slane %v382_v34, 2  ;;  %v725_v34 = vld [vmem:[#allocation8] sm:$0xff] }
 0x773   :  { %v388_v36 = vadd.f32 %v386_v35, %v1799_v14  ;;  %v1865_v35 = vld [vmem:[#allocation9 + $0x8] sm:$0xff] }
 0x774   :  { %782 = vmatpush.msrb.mxu0 %v1865_v35  ;;  %845 = vmatpush.msrb.mxu1 %v1865_v35 }
 0x775   :  { %1439 = vtanh.f32 %v388_v36  ;;  %v1375_v38 = vmul.f32 -1.442695, %v388_v36  ;;  %v1867_v36 = vld [vmem:[#allocation9] sm:$0xff] }
 0x776   :  { %783 = vmatpush.msrb.mxu0 %v1867_v36  ;;  %846 = vmatpush.msrb.mxu1 %v1867_v36 }
 0x777   :  { %1441 = vpow2.f32 %v1375_v38  ;;  %784 = vmatmul.f32.vlgmr.msrb.gmra.mxu0 %v1677_v10 }
 0x778   :  { %983 = vmatpush.msra.mxu0 %v1855_v30 }
 0x77a   :  { %984 = vmatpush.msra.mxu0 %v1858_v33 }
 0x77b   :  { %v1440_v37 = vpop.eup %1439 }
 0x77c   :  { %414 = vrot.lane.b32.xlu0 %v1440_v37, %s1678_s15  ;;  %985 = vmatpush.msra.mxu0 %v1865_v35 }
 0x77d   :  { %v1442_v39 = vpop.eup %1441 }
 0x77e   :  { %v392_v40 = vadd.f32 1.0, %v1442_v39  ;;  %986 = vmatpush.msra.mxu0 %v1867_v36 }
 0x780   :  { %1443 = vrcp.f32 %v392_v40  ;;  %v404_v46 = vand.u32 2147483648, %v392_v40  ;;  %vm398_vm2 = vweird.f32 %v392_v40  ;;  %v402_v47 = vand.u32 2147483647, %v392_v40  ;;  %1259 = vmatpush.msrb.mxu0 %v1855_v30 }
 0x782   :  { %v405_v48 = vor.u32 1.1754944e-38, %v404_v46  ;;  %vm403_vm4 = vcmp.eq.f32.partialorder %v402_v47, 8.507059e+37  ;;  %1260 = vmatpush.msrb.mxu0 %v1858_v33 }
 0x784   :  { %1261 = vmatpush.msrb.mxu0 %v1865_v35 }
 0x786   :  { %v1444_v41 = vpop.eup %1443  ;;  %1262 = vmatpush.msrb.mxu0 %v1867_v36 }
 0x787   :  { %v394_v42 = vmul.f32 %v1444_v41, %v392_v40  ;;  %vm399_vm0 = vweird.f32 %v1444_v41 }
 0x788   :  { %vm400_vm3 = vmor %vm398_vm2, %vm399_vm0 }
 0x789   :  { %v395_v43 = vsub.f32 1.0, %v394_v42 }
 0x78b   :  { %v396_v44 = vmul.f32 %v1444_v41, %v395_v43  ;;  %v1897_v43 = vld [vmem:[%s2031_s6] ss:$0 sm:$0xff] }
 0x78d   :  { %v397_v45 = vadd.f32 %v1444_v41, %v396_v44 }
 0x78f   :  { %v401_v14 = vsel %vm400_vm3, %v1444_v41, %v397_v45 }
 0x790   :  { %v406_v50 = vsel %vm403_vm4, %v405_v48, %v401_v14 }
 0x791   :  { %v412_v53 = vmul.f32 %v410_v52, %v406_v50 }
 0x7ee   :  { %v415_v49 = vpop.permute.xlu0 %414 }
 0x7ef   :  { %v417_v51 = vmul.f32 %v415_v49, %v406_v50 }
 0x7f1   :  { %419 = vrot.lane.b32.xlu1 %v417_v51, %s1679_s3 }
 0x7f4   :  { %v785_v45 = vpop.f32.mrf.mxu0 }
 0x863   :  { %v420_v54 = vpop.permute.xlu1 %419 }
 0x864   :  { %v422_v55 = vadd.f32 %v420_v54, %v412_v53 }
 0x866   :  { %1445 = vtanh.f32 %v422_v55  ;;  %v482_v21 = vrot.slane %v422_v55, 6 }
 0x86c   :  { %v1446_v56 = vpop.eup %1445 }
 0x86d   :  { %425 = vrot.lane.b32.xlu2 %v1446_v56, %s1678_s15 }
 0x8c7   :  { %v426_v57 = vpop.permute.xlu2 %425 }
 0x8c8   :  { %v428_v58 = vmul.f32 %v426_v57, %v406_v50 }
 0x8ca   :  { %v435_v59 = vrot.slane %v428_v58, 6 }
 0x8cc   :  { %436 = vrot.lane.b32.xlu0 %v435_v59, %s1679_s3 }
 0x93e   :  { %v437_v61 = vpop.permute.xlu0 %436 }
 0x93f   :  { %1376 = vmatmul.msk.f32.vlgmr.msrb.gmra.mxu2 %vm145_vm7, %v437_v61 }
 0x940   :  { %913 = vmatpush.msrb.mxu2 %v1855_v30 }
 0x942   :  { %914 = vmatpush.msrb.mxu2 %v1858_v33 }
 0x944   :  { %915 = vmatpush.msrb.mxu2 %v1865_v35 }
 0x946   :  { %916 = vmatpush.msrb.mxu2 %v1867_v36 }
 0x9c2   :  { %v457_v1 = vpop.f32.mrf.mxu2 }
 0x9c3   :  { %v460_v2 = vadd.f32 %v457_v1, %v1838_v63 }
 0x9c5   :  { %1447 = vtanh.f32 %v460_v2  ;;  %v1377_v4 = vmul.f32 -1.442695, %v460_v2 }
 0x9c7   :  { %1449 = vpow2.f32 %v1377_v4 }
 0x9cb   :  { %v1448_v3 = vpop.eup %1447 }
 0x9cc   :  { %486 = vrot.lane.b32.xlu1 %v1448_v3, %s1678_s15 }
 0x9cd   :  { %v1450_v5 = vpop.eup %1449 }
 0x9ce   :  { %v464_v6 = vadd.f32 1.0, %v1450_v5 }
 0x9d0   :  { %1451 = vrcp.f32 %v464_v6  ;;  %v476_v11 = vand.u32 2147483648, %v464_v6  ;;  %vm470_vm5 = vweird.f32 %v464_v6  ;;  %v474_v15 = vand.u32 2147483647, %v464_v6 }
 0x9d2   :  { %v477_v17 = vor.u32 1.1754944e-38, %v476_v11  ;;  %vm475_vm9 = vcmp.eq.f32.partialorder %v474_v15, 8.507059e+37 }
 0x9d6   :  { %v1452_v7 = vpop.eup %1451 }
 0x9d7   :  { %v466_v8 = vmul.f32 %v1452_v7, %v464_v6  ;;  %vm471_vm1 = vweird.f32 %v1452_v7 }
 0x9d8   :  { %vm472_vm8 = vmor %vm470_vm5, %vm471_vm1 }
 0x9d9   :  { %v467_v9 = vsub.f32 1.0, %v466_v8 }
 0x9db   :  { %v468_v12 = vmul.f32 %v1452_v7, %v467_v9 }
 0x9dd   :  { %v469_v13 = vadd.f32 %v1452_v7, %v468_v12 }
 0x9df   :  { %v473_v16 = vsel %vm472_vm8, %v1452_v7, %v469_v13 }
 0x9e0   :  { %v478_v19 = vsel %vm475_vm9, %v477_v17, %v473_v16 }
 0x9e1   :  { %v484_v22 = vmul.f32 %v482_v21, %v478_v19 }
 0xa3e   :  { %v487_v18 = vpop.permute.xlu1 %486 }
 0xa3f   :  { %v489_v20 = vmul.f32 %v487_v18, %v478_v19 }
 0xa41   :  { %491 = vrot.lane.b32.xlu2 %v489_v20, %s1679_s3 }
 0xa49   :  { %280 = vrot.lane.b32.xlu2 %v1816_v0, %s1679_s3 }
 0xa9b   :  { %v492_v23 = vpop.permute.xlu2 %491 }
 0xa9c   :  { %v1845_v24 = vadd.f32 %v492_v23, %v484_v22 }
 0xa9e   :  { %1453 = vtanh.f32 %v1845_v24  ;;  %v553_v18 = vrot.slane %v1845_v24, 6 }
 0xaa3   :  { %v281_v25 = vpop.permute.xlu2 %280 }
 0xaa4   :  { %v1454_v26 = vpop.eup %1453  ;;  %284 = vst.msk [vmem:[#allocation2] sm:$0xc] %vm283_vm10, %v281_v25 }
 0xaa5   :  { %497 = vrot.lane.b32.xlu0 %v1454_v26, %s1678_s15 }
 0xaad   :  { %355 = vrot.lane.b32.xlu0 %v1825_v31, %s1679_s3  ;;  %v726_v31 = vld [vmem:[#allocation8 + $0x8] sm:$0xff] }
 0xaae   :  { %759 = vmatpush.msra.mxu3 %v726_v31 }
 0xab0   :  { %760 = vmatpush.msra.mxu3 %v725_v34 }
 0xb17   :  { %v498_v27 = vpop.permute.xlu0 %497 }
 0xb18   :  { %v500_v28 = vmul.f32 %v498_v27, %v478_v19 }
 0xb1a   :  { %502 = vrot.lane.b32.xlu1 %v500_v28, %s1679_s3 }
 0xb1f   :  { %v356_v0 = vpop.permute.xlu0 %355 }
 0xb20   :  { %359 = vst.msk [vmem:[#allocation2] sm:$0x30] %vm358_vm11, %v356_v0 }
 0xb22   :  { %430 = vrot.lane.b32.xlu1 %v428_v58, %s1679_s3 }
 0xb8c   :  { %v503_v37 = vpop.permute.xlu1 %502 }
 0xb8d   :  { %505 = vst.msk [vmem:[#allocation2 + $0x8] sm:$0x3] %vm211_vm6, %v503_v37  ;;  %1378 = vmatmul.msk.f32.vlgmr.msrb.gmra.mxu3 %vm145_vm7, %v503_v37 }
 0xb8e   :  { %1189 = vmatpush.msrb.mxu3 %v1855_v30 }
 0xb90   :  { %1190 = vmatpush.msrb.mxu3 %v1858_v33 }
 0xb92   :  { %1191 = vmatpush.msrb.mxu3 %v1865_v35 }
 0xb94   :  { %v431_v10 = vpop.permute.xlu1 %430  ;;  %1192 = vmatpush.msrb.mxu3 %v1867_v36 }
 0xb95   :  { %434 = vst.msk [vmem:[#allocation2] sm:$0xc0] %vm433_vm12, %v431_v10 }
 0xb9c   :  { %v734_v38 = vld [vmem:[#allocation2] sm:$0xff] }
 0xb9d   :  { %1384 = vmatmul.msk.f32.vlgmr.msra.gmra.mxu3 %vm145_vm7, %v734_v38 }
 0xc10   :  { %v525_v39 = vpop.f32.mrf.mxu3 }
 0xc11   :  { %v529_v40 = vrot.slane %v525_v39, 6 }
 0xc13   :  { %v531_v41 = vadd.f32 %v529_v40, %v1838_v63 }
 0xc15   :  { %1455 = vtanh.f32 %v531_v41  ;;  %v1379_v48 = vmul.f32 -1.442695, %v531_v41 }
 0xc1b   :  { %v1456_v42 = vpop.eup %1455 }
 0xc1c   :  { %557 = vrot.lane.b32.xlu2 %v1456_v42, %s1678_s15 }
 0xc20   :  { %v762_v44 = vpop.f32.mrf.mxu3 }
 0xc21   :  { %v1900_v46 = vadd.f32 %v1897_v43, %v762_v44 }
 0xc23   :  { %v788_v47 = vadd.f32 %v785_v45, %v1900_v46 }
 0xc25   :  { %1457 = vtanh.f32 %v788_v47  ;;  %v1386_v57 = vmul.f32 -1.442695, %v788_v47 }
 0xc26   :  { %1459 = vpow2.f32 %v1379_v48 }
 0xc2b   :  { %v1458_v14 = vpop.eup %1457 }
 0xc2c   :  { %811 = vrot.lane.b32.xlu0 %v1458_v14, %s1678_s15  ;;  %v1460_v49 = vpop.eup %1459 }
 0xc2d   :  { %v535_v50 = vadd.f32 1.0, %v1460_v49 }
 0xc2f   :  { %1461 = vrcp.f32 %v535_v50  ;;  %v547_v56 = vand.u32 2147483648, %v535_v50  ;;  %vm541_vm13 = vweird.f32 %v535_v50  ;;  %v545_v58 = vand.u32 2147483647, %v535_v50 }
 0xc30   :  { %1463 = vpow2.f32 %v1386_v57 }
 0xc31   :  { %v548_v60 = vor.u32 1.1754944e-38, %v547_v56  ;;  %vm546_vm15 = vcmp.eq.f32.partialorder %v545_v58, 8.507059e+37 }
 0xc35   :  { %v1462_v51 = vpop.eup %1461 }
 0xc36   :  { %v537_v52 = vmul.f32 %v1462_v51, %v535_v50  ;;  %vm542_vm6 = vweird.f32 %v1462_v51  ;;  %v1464_v2 = vpop.eup %1463 }
 0xc37   :  { %vm543_vm14 = vmor %vm541_vm13, %vm542_vm6  ;;  %v792_v3 = vadd.f32 1.0, %v1464_v2 }
 0xc38   :  { %v538_v53 = vsub.f32 1.0, %v537_v52 }
 0xc39   :  { %1465 = vrcp.f32 %v792_v3  ;;  %v804_v9 = vand.u32 2147483648, %v792_v3  ;;  %vm798_vm2 = vweird.f32 %v792_v3  ;;  %v802_v12 = vand.u32 2147483647, %v792_v3 }
 0xc3a   :  { %v539_v54 = vmul.f32 %v1462_v51, %v538_v53 }
 0xc3b   :  { %v805_v11 = vor.u32 1.1754944e-38, %v804_v9  ;;  %vm803_vm4 = vcmp.eq.f32.partialorder %v802_v12, 8.507059e+37 }
 0xc3c   :  { %v540_v55 = vadd.f32 %v1462_v51, %v539_v54 }
 0xc3e   :  { %v544_v59 = vsel %vm543_vm14, %v1462_v51, %v540_v55 }
 0xc3f   :  { %v549_v62 = vsel %vm546_vm15, %v548_v60, %v544_v59  ;;  %v1466_v4 = vpop.eup %1465 }
 0xc40   :  { %v794_v5 = vmul.f32 %v1466_v4, %v792_v3  ;;  %vm799_vm0 = vweird.f32 %v1466_v4  ;;  %v555_v19 = vmul.f32 %v553_v18, %v549_v62 }
 0xc41   :  { %vm800_vm3 = vmor %vm798_vm2, %vm799_vm0 }
 0xc42   :  { %v795_v6 = vsub.f32 1.0, %v794_v5 }
 0xc44   :  { %v796_v7 = vmul.f32 %v1466_v4, %v795_v6 }
 0xc46   :  { %v797_v8 = vadd.f32 %v1466_v4, %v796_v7 }
 0xc48   :  { %v801_v13 = vsel %vm800_vm3, %v1466_v4, %v797_v8 }
 0xc49   :  { %v806_v16 = vsel %vm803_vm4, %v805_v11, %v801_v13 }
 0xc4a   :  { %v809_v23 = vmul.f32 0.0, %v806_v16 }
 0xc76   :  { %v558_v61 = vpop.permute.xlu2 %557 }
 0xc77   :  { %v560_v1 = vmul.f32 %v558_v61, %v549_v62 }
 0xc79   :  { %562 = vrot.lane.b32.xlu1 %v560_v1, %s1679_s3 }
 0xc9e   :  { %v812_v15 = vpop.permute.xlu0 %811 }
 0xc9f   :  { %v814_v17 = vmul.f32 %v812_v15, %v806_v16 }
 0xca1   :  { %816 = vrot.lane.b32.xlu2 %v814_v17, %s1679_s3 }
 0xceb   :  { %v563_v20 = vpop.permute.xlu1 %562 }
 0xcec   :  { %v1907_v21 = vadd.f32 %v563_v20, %v555_v19 }
 0xcee   :  { %1467 = vtanh.f32 %v1907_v21  ;;  %v627_v15 = vrot.slane %v1907_v21, 6 }
 0xcf4   :  { %v1468_v22 = vpop.eup %1467 }
 0xcf5   :  { %568 = vrot.lane.b32.xlu0 %v1468_v22, %s1678_s15 }
 0xcfb   :  { %v817_v25 = vpop.permute.xlu2 %816 }
 0xcfc   :  { %v1911_v26 = vadd.f32 %v817_v25, %v809_v23 }
 0xcfe   :  { %1469 = vtanh.f32 %v1911_v26  ;;  %v876_v20 = vrot.slane %v1911_v26, 6 }
 0xd04   :  { %v1470_v27 = vpop.eup %1469 }
 0xd05   :  { %822 = vrot.lane.b32.xlu1 %v1470_v27, %s1678_s15 }
 0xd67   :  { %v569_v28 = vpop.permute.xlu0 %568 }
 0xd68   :  { %v1915_v24 = vmul.f32 %v569_v28, %v549_v62 }
 0xd6a   :  { %v577_v0 = vrot.slane %v1915_v24, 2 }
 0xd6c   :  { %578 = vrot.lane.b32.xlu2 %v577_v0, %s1679_s3 }
 0xd77   :  { %v823_v29 = vpop.permute.xlu1 %822 }
 0xd78   :  { %v825_v32 = vmul.f32 %v823_v29, %v806_v16 }
 0xd7a   :  { %827 = vrot.lane.b32.xlu0 %v825_v32, %s1679_s3 }
 0xdc6   :  { %v579_v31 = vpop.permute.xlu2 %578 }
 0xdc7   :  { %1380 = vmatmul.msk.f32.vlgmr.msra.gmra.mxu1 %vm145_vm7, %v579_v31 }
 0xdc8   :  { %1053 = vmatpush.msra.mxu1 %v1855_v30 }
 0xdca   :  { %1054 = vmatpush.msra.mxu1 %v1858_v33 }
 0xdcc   :  { %1055 = vmatpush.msra.mxu1 %v1865_v35 }
 0xdce   :  { %1056 = vmatpush.msra.mxu1 %v1867_v36 }
 0xdec   :  { %v828_v34 = vpop.permute.xlu0 %827 }
 0xded   :  { %1387 = vmatmul.msk.f32.vlgmr.msrb.gmra.mxu1 %vm145_vm7, %v828_v34 }
 0xe44   :  { %v599_v37 = vpop.f32.mrf.mxu1 }
 0xe45   :  { %v603_v10 = vrot.slane %v599_v37, 4 }
 0xe47   :  { %v605_v38 = vadd.f32 %v603_v10, %v1838_v63 }
 0xe49   :  { %1471 = vtanh.f32 %v605_v38  ;;  %v1381_v45 = vmul.f32 -1.442695, %v605_v38 }
 0xe4f   :  { %v1472_v39 = vpop.eup %1471 }
 0xe50   :  { %631 = vrot.lane.b32.xlu1 %v1472_v39, %s1678_s15 }
 0xe6a   :  { %v848_v40 = vpop.f32.mrf.mxu1 }
 0xe6b   :  { %v852_v41 = vrot.slane %v848_v40, 6 }
 0xe6d   :  { %v854_v42 = vadd.f32 %v852_v41, %v1900_v46 }
 0xe6f   :  { %1473 = vtanh.f32 %v854_v42  ;;  %v1388_v48 = vmul.f32 -1.442695, %v854_v42 }
 0xe70   :  { %1475 = vpow2.f32 %v1381_v45 }
 0xe75   :  { %v1474_v44 = vpop.eup %1473 }
 0xe76   :  { %880 = vrot.lane.b32.xlu2 %v1474_v44, %s1678_s15  ;;  %v1476_v47 = vpop.eup %1475 }
 0xe77   :  { %v609_v14 = vadd.f32 1.0, %v1476_v47 }
 0xe79   :  { %1477 = vrcp.f32 %v609_v14  ;;  %v621_v57 = vand.u32 2147483648, %v609_v14  ;;  %vm615_vm5 = vweird.f32 %v609_v14  ;;  %v619_v58 = vand.u32 2147483647, %v609_v14 }
 0xe7a   :  { %1479 = vpow2.f32 %v1388_v48 }
 0xe7b   :  { %v622_v61 = vor.u32 1.1754944e-38, %v621_v57  ;;  %vm620_vm9 = vcmp.eq.f32.partialorder %v619_v58, 8.507059e+37 }
 0xe7f   :  { %v1478_v49 = vpop.eup %1477 }
 0xe80   :  { %v1480_v50 = vpop.eup %1479  ;;  %v611_v51 = vmul.f32 %v1478_v49, %v609_v14  ;;  %vm616_vm1 = vweird.f32 %v1478_v49 }
 0xe81   :  { %v858_v52 = vadd.f32 1.0, %v1480_v50  ;;  %vm617_vm8 = vmor %vm615_vm5, %vm616_vm1 }
 0xe82   :  { %v612_v53 = vsub.f32 1.0, %v611_v51 }
 0xe83   :  { %1481 = vrcp.f32 %v858_v52  ;;  %v870_v6 = vand.u32 2147483648, %v858_v52  ;;  %vm864_vm13 = vweird.f32 %v858_v52  ;;  %v868_v7 = vand.u32 2147483647, %v858_v52 }
 0xe84   :  { %v613_v54 = vmul.f32 %v1478_v49, %v612_v53 }
 0xe85   :  { %v871_v9 = vor.u32 1.1754944e-38, %v870_v6  ;;  %vm869_vm15 = vcmp.eq.f32.partialorder %v868_v7, 8.507059e+37 }
 0xe86   :  { %v614_v56 = vadd.f32 %v1478_v49, %v613_v54 }
 0xe88   :  { %v618_v60 = vsel %vm617_vm8, %v1478_v49, %v614_v56 }
 0xe89   :  { %v1482_v55 = vpop.eup %1481  ;;  %v623_v1 = vsel %vm620_vm9, %v622_v61, %v618_v60 }
 0xe8a   :  { %v860_v59 = vmul.f32 %v1482_v55, %v858_v52  ;;  %vm865_vm6 = vweird.f32 %v1482_v55  ;;  %v629_v16 = vmul.f32 %v627_v15, %v623_v1 }
 0xe8b   :  { %vm866_vm14 = vmor %vm864_vm13, %vm865_vm6 }
 0xe8c   :  { %v861_v62 = vsub.f32 1.0, %v860_v59 }
 0xe8e   :  { %v862_v4 = vmul.f32 %v1482_v55, %v861_v62 }
 0xe90   :  { %v863_v5 = vadd.f32 %v1482_v55, %v862_v4 }
 0xe92   :  { %v867_v8 = vsel %vm866_vm14, %v1482_v55, %v863_v5 }
 0xe93   :  { %v872_v13 = vsel %vm869_vm15, %v871_v9, %v867_v8 }
 0xe94   :  { %v878_v22 = vmul.f32 %v876_v20, %v872_v13 }
 0xec2   :  { %v632_v2 = vpop.permute.xlu1 %631 }
 0xec3   :  { %v634_v3 = vmul.f32 %v632_v2, %v623_v1 }
 0xec5   :  { %636 = vrot.lane.b32.xlu0 %v634_v3, %s1679_s3 }
 0xed0   :  { %v881_v12 = vpop.permute.xlu2 %880 }
 0xed1   :  { %v883_v11 = vmul.f32 %v881_v12, %v872_v13 }
 0xed3   :  { %885 = vrot.lane.b32.xlu1 %v883_v11, %s1679_s3 }
 0xf37   :  { %v637_v17 = vpop.permute.xlu0 %636 }
 0xf38   :  { %v1933_v18 = vadd.f32 %v637_v17, %v629_v16 }
 0xf3a   :  { %1483 = vtanh.f32 %v1933_v18 }
 0xf40   :  { %v1484_v19 = vpop.eup %1483 }
 0xf41   :  { %642 = vrot.lane.b32.xlu2 %v1484_v19, %s1678_s15 }
 0xf45   :  { %v886_v23 = vpop.permute.xlu1 %885 }
 0xf46   :  { %v888_v25 = vadd.f32 %v886_v23, %v878_v22 }
 0xf48   :  { %1485 = vtanh.f32 %v888_v25  ;;  %v946_v56 = vrot.slane %v888_v25, 6  ;;  %v701_v25 = vrot.slane %v1933_v18, 6 }
 0xf4e   :  { %v1486_v27 = vpop.eup %1485 }
 0xf4f   :  { %891 = vrot.lane.b32.xlu0 %v1486_v27, %s1678_s15 }
 0xf9b   :  { %v643_v28 = vpop.permute.xlu2 %642 }
 0xf9c   :  { %v1939_v21 = vmul.f32 %v643_v28, %v623_v1 }
 0xf9e   :  { %v651_v0 = vrot.slane %v1939_v21, 4 }
 0xfa0   :  { %652 = vrot.lane.b32.xlu1 %v651_v0, %s1679_s3 }
 0xfc1   :  { %v892_v29 = vpop.permute.xlu0 %891 }
 0xfc2   :  { %v894_v32 = vmul.f32 %v892_v29, %v872_v13 }
 0xfc4   :  { %v896_v31 = vrot.slane %v894_v32, 2 }
 0xfc6   :  { %897 = vrot.lane.b32.xlu2 %v896_v31, %s1679_s3 }
0x1012   :  { %v653_v26 = vpop.permute.xlu1 %652 }
0x1013   :  { %1382 = vmatmul.msk.f32.vlgmr.msra.gmra.mxu2 %vm145_vm7, %v653_v26 }
0x1014   :  { %1119 = vmatpush.msra.mxu2 %v1855_v30 }
0x1016   :  { %1120 = vmatpush.msra.mxu2 %v1858_v33 }
0x1018   :  { %1121 = vmatpush.msra.mxu2 %v1865_v35 }
0x101a   :  { %1122 = vmatpush.msra.mxu2 %v1867_v36 }
0x1020   :  { %v898_v34 = vpop.permute.xlu2 %897 }
0x1021   :  { %1389 = vmatmul.msk.f32.vlgmr.msrb.gmra.mxu2 %vm145_vm7, %v898_v34 }
0x1096   :  { %v673_v37 = vpop.f32.mrf.mxu2 }
0x1097   :  { %v677_v48 = vrot.slane %v673_v37, 2 }
0x1099   :  { %v679_v51 = vadd.f32 %v677_v48, %v1838_v63 }
0x109b   :  { %v1383_v63 = vmul.f32 -1.442695, %v679_v51 }
0x10a4   :  { %v918_v10 = vpop.f32.mrf.mxu2 }
0x10a5   :  { %v922_v38 = vrot.slane %v918_v10, 4 }
0x10a7   :  { %v924_v39 = vadd.f32 %v922_v38, %v1900_v46 }
0x10a9   :  { %1487 = vtanh.f32 %v924_v39  ;;  %v1390_v41 = vmul.f32 -1.442695, %v924_v39 }
0x10ab   :  { %1489 = vpow2.f32 %v1390_v41 }
0x10af   :  { %v1488_v40 = vpop.eup %1487 }
0x10b0   :  { %950 = vrot.lane.b32.xlu0 %v1488_v40, %s1678_s15 }
0x10b1   :  { %v1490_v30 = vpop.eup %1489 }
0x10b2   :  { %v928_v33 = vadd.f32 1.0, %v1490_v30 }
0x10b4   :  { %1491 = vrcp.f32 %v928_v33  ;;  %v940_v47 = vand.u32 2147483648, %v928_v33  ;;  %vm934_vm2 = vweird.f32 %v928_v33  ;;  %v938_v14 = vand.u32 2147483647, %v928_v33 }
0x10b5   :  { %1493 = vtanh.f32 %v679_v51 }
0x10b6   :  { %v941_v50 = vor.u32 1.1754944e-38, %v940_v47  ;;  %vm939_vm4 = vcmp.eq.f32.partialorder %v938_v14, 8.507059e+37 }
0x10ba   :  { %v1492_v35 = vpop.eup %1491 }
0x10bb   :  { %v930_v42 = vmul.f32 %v1492_v35, %v928_v33  ;;  %vm935_vm0 = vweird.f32 %v1492_v35  ;;  %v1494_v55 = vpop.eup %1493 }
0x10bc   :  { %vm936_vm3 = vmor %vm934_vm2, %vm935_vm0 }
0x10bd   :  { %v931_v36 = vsub.f32 1.0, %v930_v42 }
0x10bf   :  { %v932_v44 = vmul.f32 %v1492_v35, %v931_v36 }
0x10c1   :  { %v933_v45 = vadd.f32 %v1492_v35, %v932_v44 }
0x10c3   :  { %v937_v49 = vsel %vm936_vm3, %v1492_v35, %v933_v45 }
0x10c4   :  { %v942_v53 = vsel %vm939_vm4, %v941_v50, %v937_v49 }
0x10c5   :  { %v948_v57 = vmul.f32 %v946_v56, %v942_v53 }
0x1122   :  { %v951_v52 = vpop.permute.xlu0 %950 }
0x1123   :  { %v953_v54 = vmul.f32 %v951_v52, %v942_v53 }
0x1125   :  { %955 = vrot.lane.b32.xlu1 %v953_v54, %s1679_s3 }
0x112d   :  { %705 = vrot.lane.b32.xlu1 %v1494_v55, %s1678_s15 }
0x1197   :  { %v956_v58 = vpop.permute.xlu1 %955 }
0x1198   :  { %v1955_v59 = vadd.f32 %v956_v58, %v948_v57 }
0x119a   :  { %1495 = vtanh.f32 %v1955_v59  ;;  %v1016_v44 = vrot.slane %v1955_v59, 6 }
0x119b   :  { %1497 = vpow2.f32 %v1383_v63 }
0x119f   :  { %v706_v11 = vpop.permute.xlu1 %705 }
0x11a0   :  { %v1496_v60 = vpop.eup %1495 }
0x11a1   :  { %961 = vrot.lane.b32.xlu2 %v1496_v60, %s1678_s15  ;;  %v1498_v61 = vpop.eup %1497 }
0x11a2   :  { %v683_v62 = vadd.f32 1.0, %v1498_v61 }
0x11a4   :  { %1499 = vrcp.f32 %v683_v62  ;;  %v695_v9 = vand.u32 2147483648, %v683_v62  ;;  %vm689_vm5 = vweird.f32 %v683_v62  ;;  %v693_v12 = vand.u32 2147483647, %v683_v62 }
0x11a6   :  { %v696_v15 = vor.u32 1.1754944e-38, %v695_v9  ;;  %vm694_vm9 = vcmp.eq.f32.partialorder %v693_v12, 8.507059e+37 }
0x11aa   :  { %v1500_v1 = vpop.eup %1499 }
0x11ab   :  { %v685_v2 = vmul.f32 %v1500_v1, %v683_v62  ;;  %vm690_vm1 = vweird.f32 %v1500_v1 }
0x11ac   :  { %vm691_vm8 = vmor %vm689_vm5, %vm690_vm1 }
0x11ad   :  { %v686_v3 = vsub.f32 1.0, %v685_v2 }
0x11af   :  { %v687_v4 = vmul.f32 %v1500_v1, %v686_v3 }
0x11b1   :  { %v688_v7 = vadd.f32 %v1500_v1, %v687_v4 }
0x11b3   :  { %v692_v13 = vsel %vm691_vm8, %v1500_v1, %v688_v7 }
0x11b4   :  { %v697_v16 = vsel %vm694_vm9, %v696_v15, %v692_v13 }
0x11b5   :  { %v708_v17 = vmul.f32 %v706_v11, %v697_v16  ;;  %v703_v28 = vmul.f32 %v701_v25, %v697_v16 }
0x11fb   :  { %v962_v5 = vpop.permute.xlu2 %961 }
0x11fc   :  { %v964_v6 = vmul.f32 %v962_v5, %v942_v53 }
0x11fe   :  { %v966_v8 = vrot.slane %v964_v6, 4 }
0x1200   :  { %967 = vrot.lane.b32.xlu0 %v966_v8, %s1679_s3 }
0x1208   :  { %710 = vrot.lane.b32.xlu0 %v708_v17, %s1679_s3 }
0x1272   :  { %v968_v19 = vpop.permute.xlu0 %967 }
0x1273   :  { %1391 = vmatmul.msk.f32.vlgmr.msra.gmra.mxu0 %vm145_vm7, %v968_v19 }
0x127a   :  { %v711_v27 = vpop.permute.xlu0 %710 }
0x127b   :  { %v713_v0 = vadd.f32 %v711_v27, %v703_v28 }
0x12f0   :  { %v988_v20 = vpop.f32.mrf.mxu0 }
0x12f1   :  { %v992_v22 = vrot.slane %v988_v20, 2 }
0x12f3   :  { %v994_v23 = vadd.f32 %v992_v22, %v1900_v46 }
0x12f5   :  { %1501 = vtanh.f32 %v994_v23  ;;  %v1392_v31 = vmul.f32 -1.442695, %v994_v23 }
0x12f6   :  { %1503 = vtanh.f32 %v713_v0 }
0x12f7   :  { %1505 = vpow2.f32 %v1392_v31 }
0x12fb   :  { %v1502_v29 = vpop.eup %1501 }
0x12fc   :  { %1020 = vrot.lane.b32.xlu2 %v1502_v29, %s1678_s15  ;;  %v1504_v32 = vpop.eup %1503 }
0x12fd   :  { %v1506_v26 = vpop.eup %1505 }
0x12fe   :  { %v998_v46 = vadd.f32 1.0, %v1506_v26 }
0x1300   :  { %1507 = vrcp.f32 %v998_v46  ;;  %v1010_v39 = vand.u32 2147483648, %v998_v46  ;;  %vm1004_vm13 = vweird.f32 %v998_v46  ;;  %v1008_v40 = vand.u32 2147483647, %v998_v46 }
0x1302   :  { %v1011_v30 = vor.u32 1.1754944e-38, %v1010_v39  ;;  %vm1009_vm15 = vcmp.eq.f32.partialorder %v1008_v40, 8.507059e+37 }
0x1304   :  { %716 = vrot.lane.b32.xlu2 %v1504_v32, %s1678_s15 }
0x1306   :  { %v1508_v18 = vpop.eup %1507 }
0x1307   :  { %v1000_v34 = vmul.f32 %v1508_v18, %v998_v46  ;;  %vm1005_vm6 = vweird.f32 %v1508_v18 }
0x1308   :  { %vm1006_vm14 = vmor %vm1004_vm13, %vm1005_vm6 }
0x1309   :  { %v1001_v37 = vsub.f32 1.0, %v1000_v34 }
0x130b   :  { %v1002_v10 = vmul.f32 %v1508_v18, %v1001_v37 }
0x130c   :  { %647 = vrot.lane.b32.xlu2 %v1939_v21, %s1679_s3 }
0x130d   :  { %v1003_v38 = vadd.f32 %v1508_v18, %v1002_v10 }
0x130f   :  { %v1007_v41 = vsel %vm1006_vm14, %v1508_v18, %v1003_v38 }
0x1310   :  { %v1012_v21 = vsel %vm1009_vm15, %v1011_v30, %v1007_v41 }
0x1311   :  { %v1018_v45 = vmul.f32 %v1016_v44, %v1012_v21 }
0x1356   :  { %v1021_v33 = vpop.permute.xlu2 %1020 }
0x1357   :  { %v1023_v35 = vmul.f32 %v1021_v33, %v1012_v21 }
0x1359   :  { %1025 = vrot.lane.b32.xlu1 %v1023_v35, %s1679_s3 }
0x135e   :  { %v717_v42 = vpop.permute.xlu2 %716 }
0x135f   :  { %v719_v50 = vmul.f32 %v717_v42, %v697_v16 }
0x1361   :  { %573 = vrot.lane.b32.xlu1 %v1915_v24, %s1679_s3 }
0x1366   :  { %v648_v36 = vpop.permute.xlu2 %647 }
0x1367   :  { %650 = vst.msk [vmem:[#allocation2 + $0x8] sm:$0x30] %vm358_vm11, %v648_v36 }
0x13cb   :  { %v1026_v47 = vpop.permute.xlu1 %1025 }
0x13cc   :  { %v1028_v14 = vadd.f32 %v1026_v47, %v1018_v45 }
0x13ce   :  { %1509 = vtanh.f32 %v1028_v14  ;;  %v1083_v11 = vrot.slane %v1028_v14, 6 }
0x13d3   :  { %v574_v48 = vpop.permute.xlu1 %573 }
0x13d4   :  { %v1510_v49 = vpop.eup %1509  ;;  %576 = vst.msk [vmem:[#allocation2 + $0x8] sm:$0xc] %vm283_vm10, %v574_v48 }
0x13d5   :  { %1031 = vrot.lane.b32.xlu0 %v1510_v49, %s1678_s15 }
0x13dd   :  { %721 = vrot.lane.b32.xlu0 %v719_v50, %s1679_s3 }
0x1447   :  { %v1032_v51 = vpop.permute.xlu0 %1031 }
0x1448   :  { %v1034_v24 = vmul.f32 %v1032_v51, %v1012_v21 }
0x144a   :  { %v1036_v52 = vrot.slane %v1034_v24, 6 }
0x144c   :  { %1037 = vrot.lane.b32.xlu1 %v1036_v52, %s1679_s3 }
0x144f   :  { %v722_v53 = vpop.permute.xlu0 %721 }
0x1450   :  { %724 = vst.msk [vmem:[#allocation2 + $0x8] sm:$0xc0] %vm433_vm12, %v722_v53 }
0x1457   :  { %v735_v54 = vld [vmem:[#allocation2 + $0x8] sm:$0xff] }
0x1458   :  { %1385 = vmatmul.msk.f32.gmra.mxu3 %vm145_vm7, %v735_v54 }
0x14be   :  { %v1038_v55 = vpop.permute.xlu1 %1037 }
0x14bf   :  { %1393 = vmatmul.msk.f32.vlgmr.msra.gmra.mxu1 %vm145_vm7, %v1038_v55 }
0x14db   :  { %v765_v56 = vpop.f32.mrf.mxu3 }
0x14dc   :  { %v1981_v57 = vadd.f32 %v1897_v43, %v765_v56 }
0x153c   :  { %v1058_v58 = vpop.f32.mrf.mxu1 }
0x153d   :  { %v1061_v59 = vadd.f32 %v1058_v58, %v1981_v57 }
0x153f   :  { %1511 = vtanh.f32 %v1061_v59  ;;  %v1394_v63 = vmul.f32 -1.442695, %v1061_v59 }
0x1541   :  { %1513 = vpow2.f32 %v1394_v63 }
0x1545   :  { %v1512_v60 = vpop.eup %1511 }
0x1546   :  { %1087 = vrot.lane.b32.xlu2 %v1512_v60, %s1678_s15 }
0x1547   :  { %v1514_v61 = vpop.eup %1513 }
0x1548   :  { %v1065_v62 = vadd.f32 1.0, %v1514_v61 }
0x154a   :  { %1515 = vrcp.f32 %v1065_v62  ;;  %v1077_v43 = vand.u32 2147483648, %v1065_v62  ;;  %vm1071_vm11 = vweird.f32 %v1065_v62  ;;  %v1075_v6 = vand.u32 2147483647, %v1065_v62 }
0x154c   :  { %v1078_v8 = vor.u32 1.1754944e-38, %v1077_v43  ;;  %vm1076_vm0 = vcmp.eq.f32.partialorder %v1075_v6, 8.507059e+37 }
0x1550   :  { %v1516_v1 = vpop.eup %1515 }
0x1551   :  { %v1067_v2 = vmul.f32 %v1516_v1, %v1065_v62  ;;  %vm1072_vm10 = vweird.f32 %v1516_v1 }
0x1552   :  { %vm1073_vm12 = vmor %vm1071_vm11, %vm1072_vm10  ;;  %vm1345_vm11 = vcmask 9216  }
0x1553   :  { %v1068_v3 = vsub.f32 1.0, %v1067_v2 }
0x1555   :  { %v1069_v4 = vmul.f32 %v1516_v1, %v1068_v3 }
0x1557   :  { %v1070_v5 = vadd.f32 %v1516_v1, %v1069_v4 }
0x1559   :  { %v1074_v7 = vsel %vm1073_vm12, %v1516_v1, %v1070_v5 }
0x155a   :  { %v1079_v12 = vsel %vm1076_vm0, %v1078_v8, %v1074_v7 }
0x155b   :  { %v1085_v15 = vmul.f32 %v1083_v11, %v1079_v12 }
0x15a0   :  { %v1088_v9 = vpop.permute.xlu2 %1087 }
0x15a1   :  { %v1090_v13 = vmul.f32 %v1088_v9, %v1079_v12 }
0x15a3   :  { %1092 = vrot.lane.b32.xlu0 %v1090_v13, %s1679_s3 }
0x1615   :  { %v1093_v16 = vpop.permute.xlu0 %1092 }
0x1616   :  { %v1095_v17 = vadd.f32 %v1093_v16, %v1085_v15 }
0x1618   :  { %1517 = vtanh.f32 %v1095_v17  ;;  %v1152_v21 = vrot.slane %v1095_v17, 6 }
0x161e   :  { %v1518_v19 = vpop.eup %1517 }
0x161f   :  { %1098 = vrot.lane.b32.xlu1 %v1518_v19, %s1678_s15 }
0x1691   :  { %v1099_v20 = vpop.permute.xlu1 %1098 }
0x1692   :  { %v1101_v22 = vmul.f32 %v1099_v20, %v1079_v12 }
0x1694   :  { %1103 = vrot.lane.b32.xlu2 %v1101_v22, %s1679_s3 }
0x16ee   :  { %v1104_v23 = vpop.permute.xlu2 %1103 }
0x16ef   :  { %1395 = vmatmul.msk.f32.vlgmr.msra.gmra.mxu2 %vm145_vm7, %v1104_v23 }
0x1772   :  { %v1124_v25 = vpop.f32.mrf.mxu2 }
0x1773   :  { %v1128_v27 = vrot.slane %v1124_v25, 6 }
0x1775   :  { %v1130_v28 = vadd.f32 %v1128_v27, %v1981_v57 }
0x1777   :  { %1519 = vtanh.f32 %v1130_v28  ;;  %v1396_v29 = vmul.f32 -1.442695, %v1130_v28 }
0x1779   :  { %1521 = vpow2.f32 %v1396_v29 }
0x177d   :  { %v1520_v0 = vpop.eup %1519 }
0x177e   :  { %1156 = vrot.lane.b32.xlu0 %v1520_v0, %s1678_s15 }
0x177f   :  { %v1522_v32 = vpop.eup %1521 }
0x1780   :  { %v1134_v31 = vadd.f32 1.0, %v1522_v32 }
0x1782   :  { %1523 = vrcp.f32 %v1134_v31  ;;  %v1146_v10 = vand.u32 2147483648, %v1134_v31  ;;  %vm1140_vm3 = vweird.f32 %v1134_v31  ;;  %v1144_v38 = vand.u32 2147483647, %v1134_v31 }
0x1784   :  { %v1147_v40 = vor.u32 1.1754944e-38, %v1146_v10  ;;  %vm1145_vm1 = vcmp.eq.f32.partialorder %v1144_v38, 8.507059e+37 }
0x1788   :  { %v1524_v26 = vpop.eup %1523 }
0x1789   :  { %v1136_v46 = vmul.f32 %v1524_v26, %v1134_v31  ;;  %vm1141_vm2 = vweird.f32 %v1524_v26 }
0x178a   :  { %vm1142_vm4 = vmor %vm1140_vm3, %vm1141_vm2 }
0x178b   :  { %v1137_v18 = vsub.f32 1.0, %v1136_v46 }
0x178d   :  { %v1138_v34 = vmul.f32 %v1524_v26, %v1137_v18 }
0x178f   :  { %v1139_v37 = vadd.f32 %v1524_v26, %v1138_v34 }
0x1791   :  { %v1143_v39 = vsel %vm1142_vm4, %v1524_v26, %v1139_v37 }
0x1792   :  { %v1148_v30 = vsel %vm1145_vm1, %v1147_v40, %v1143_v39 }
0x1793   :  { %v1154_v35 = vmul.f32 %v1152_v21, %v1148_v30  ;;  %v1311_v21 = vld [vmem:[%s2032_s7] sm:$0xff] }
0x17f0   :  { %v1157_v41 = vpop.permute.xlu0 %1156 }
0x17f1   :  { %v1159_v33 = vmul.f32 %v1157_v41, %v1148_v30  ;;  %v1314_v41 = vld [vmem:[%s2032_s7 + $0x18] sm:$0xff] }
0x17f2   :  { %1337 = vmatpush.msrb.mxu1 %v1314_v41 }
0x17f3   :  { %1161 = vrot.lane.b32.xlu1 %v1159_v33, %s1679_s3  ;;  %v1312_v33 = vld [vmem:[%s2032_s7 + $0x8] sm:$0xff] }
0x1865   :  { %v1162_v42 = vpop.permute.xlu1 %1161 }
0x1866   :  { %v1164_v36 = vadd.f32 %v1162_v42, %v1154_v35 }
0x1868   :  { %1525 = vtanh.f32 %v1164_v36  ;;  %v1222_v5 = vrot.slane %v1164_v36, 6 }
0x186e   :  { %v1526_v44 = vpop.eup %1525 }
0x186f   :  { %1167 = vrot.lane.b32.xlu2 %v1526_v44, %s1678_s15 }
0x18c9   :  { %v1168_v45 = vpop.permute.xlu2 %1167 }
0x18ca   :  { %v1170_v47 = vmul.f32 %v1168_v45, %v1148_v30  ;;  %v1313_v30 = vld [vmem:[%s2032_s7 + $0x10] sm:$0xff]  ;;  %v1414_v45 = vld [vmem:[%s2033_s8] ss:$0 sm:$0xff]  ;;  %s1354_s7 = sshll.u32 %s2034_s9, 4  ;;  %s1355_s7 = int_to_ptr.hbm [resolvable:$true] %s1354_s7 }
0x18cb   :  { %1338 = vmatpush.msrb.mxu1 %v1313_v30 }
0x18cc   :  { %v1172_v14 = vrot.slane %v1170_v47, 2 }
0x18cd   :  { %1339 = vmatpush.msrb.mxu1 %v1312_v33 }
0x18ce   :  { %1173 = vrot.lane.b32.xlu0 %v1172_v14, %s1679_s3 }
0x18cf   :  { %1340 = vmatpush.msrb.mxu1 %v1311_v21 }
0x1940   :  { %v1174_v48 = vpop.permute.xlu0 %1173 }
0x1941   :  { %1397 = vmatmul.msk.f32.vlgmr.msrb.gmra.mxu3 %vm145_vm7, %v1174_v48 }
0x19c4   :  { %v1194_v49 = vpop.f32.mrf.mxu3 }
0x19c5   :  { %v1198_v50 = vrot.slane %v1194_v49, 4 }
0x19c7   :  { %v1200_v51 = vadd.f32 %v1198_v50, %v1981_v57 }
0x19c9   :  { %1527 = vtanh.f32 %v1200_v51  ;;  %v1398_v52 = vmul.f32 -1.442695, %v1200_v51 }
0x19cb   :  { %1529 = vpow2.f32 %v1398_v52 }
0x19cf   :  { %v1528_v24 = vpop.eup %1527 }
0x19d0   :  { %1226 = vrot.lane.b32.xlu1 %v1528_v24, %s1678_s15 }
0x19d1   :  { %v1530_v53 = vpop.eup %1529 }
0x19d2   :  { %v1204_v54 = vadd.f32 1.0, %v1530_v53 }
0x19d4   :  { %1531 = vrcp.f32 %v1204_v54  ;;  %v1216_v63 = vand.u32 2147483648, %v1204_v54  ;;  %vm1210_vm8 = vweird.f32 %v1204_v54  ;;  %v1214_v61 = vand.u32 2147483647, %v1204_v54 }
0x19d6   :  { %v1217_v1 = vor.u32 1.1754944e-38, %v1216_v63  ;;  %vm1215_vm6 = vcmp.eq.f32.partialorder %v1214_v61, 8.507059e+37 }
0x19da   :  { %v1532_v55 = vpop.eup %1531 }
0x19db   :  { %v1206_v56 = vmul.f32 %v1532_v55, %v1204_v54  ;;  %vm1211_vm5 = vweird.f32 %v1532_v55 }
0x19dc   :  { %vm1212_vm9 = vmor %vm1210_vm8, %vm1211_vm5 }
0x19dd   :  { %v1207_v58 = vsub.f32 1.0, %v1206_v56 }
0x19df   :  { %v1208_v59 = vmul.f32 %v1532_v55, %v1207_v58 }
0x19e1   :  { %v1209_v60 = vadd.f32 %v1532_v55, %v1208_v59 }
0x19e3   :  { %v1213_v62 = vsel %vm1212_vm9, %v1532_v55, %v1209_v60 }
0x19e4   :  { %v1218_v3 = vsel %vm1215_vm6, %v1217_v1, %v1213_v62 }
0x19e5   :  { %v1224_v43 = vmul.f32 %v1222_v5, %v1218_v3 }
0x1a42   :  { %v1227_v2 = vpop.permute.xlu1 %1226 }
0x1a43   :  { %v1229_v4 = vmul.f32 %v1227_v2, %v1218_v3 }
0x1a45   :  { %1231 = vrot.lane.b32.xlu2 %v1229_v4, %s1679_s3 }
0x1a9f   :  { %v1232_v6 = vpop.permute.xlu2 %1231 }
0x1aa0   :  { %v1234_v7 = vadd.f32 %v1232_v6, %v1224_v43 }
0x1aa2   :  { %1533 = vtanh.f32 %v1234_v7  ;;  %v1292_v37 = vrot.slane %v1234_v7, 6 }
0x1aa8   :  { %v1534_v8 = vpop.eup %1533 }
0x1aa9   :  { %1237 = vrot.lane.b32.xlu0 %v1534_v8, %s1678_s15 }
0x1b1b   :  { %v1238_v9 = vpop.permute.xlu0 %1237 }
0x1b1c   :  { %v1240_v12 = vmul.f32 %v1238_v9, %v1218_v3 }
0x1b1e   :  { %v1242_v13 = vrot.slane %v1240_v12, 4 }
0x1b20   :  { %1243 = vrot.lane.b32.xlu1 %v1242_v13, %s1679_s3 }
0x1b92   :  { %v1244_v11 = vpop.permute.xlu1 %1243 }
0x1b93   :  { %1399 = vmatmul.msk.f32.vlgmr.msrb.gmra.mxu0 %vm145_vm7, %v1244_v11 }
0x1c10   :  { %v1264_v15 = vpop.f32.mrf.mxu0 }
0x1c11   :  { %v1268_v16 = vrot.slane %v1264_v15, 2 }
0x1c13   :  { %v1270_v17 = vadd.f32 %v1268_v16, %v1981_v57 }
0x1c15   :  { %1535 = vtanh.f32 %v1270_v17  ;;  %v1400_v20 = vmul.f32 -1.442695, %v1270_v17 }
0x1c17   :  { %1537 = vpow2.f32 %v1400_v20 }
0x1c1b   :  { %v1536_v19 = vpop.eup %1535 }
0x1c1c   :  { %1296 = vrot.lane.b32.xlu2 %v1536_v19, %s1678_s15 }
0x1c1d   :  { %v1538_v22 = vpop.eup %1537 }
0x1c1e   :  { %v1274_v23 = vadd.f32 1.0, %v1538_v22 }
0x1c20   :  { %1539 = vrcp.f32 %v1274_v23  ;;  %v1286_v32 = vand.u32 2147483648, %v1274_v23  ;;  %vm1280_vm14 = vweird.f32 %v1274_v23  ;;  %v1284_v31 = vand.u32 2147483647, %v1274_v23 }
0x1c22   :  { %v1287_v26 = vor.u32 1.1754944e-38, %v1286_v32  ;;  %vm1285_vm10 = vcmp.eq.f32.partialorder %v1284_v31, 8.507059e+37 }
0x1c26   :  { %v1540_v25 = vpop.eup %1539 }
0x1c27   :  { %v1276_v27 = vmul.f32 %v1540_v25, %v1274_v23  ;;  %vm1281_vm13 = vweird.f32 %v1540_v25 }
0x1c28   :  { %vm1282_vm15 = vmor %vm1280_vm14, %vm1281_vm13 }
0x1c29   :  { %v1277_v28 = vsub.f32 1.0, %v1276_v27 }
0x1c2b   :  { %v1278_v0 = vmul.f32 %v1540_v25, %v1277_v28 }
0x1c2d   :  { %v1279_v29 = vadd.f32 %v1540_v25, %v1278_v0 }
0x1c2f   :  { %v1283_v57 = vsel %vm1282_vm15, %v1540_v25, %v1279_v29 }
0x1c30   :  { %v1288_v18 = vsel %vm1285_vm10, %v1287_v26, %v1283_v57 }
0x1c31   :  { %v1294_v10 = vmul.f32 %v1292_v37, %v1288_v18 }
0x1c76   :  { %v1297_v46 = vpop.permute.xlu2 %1296 }
0x1c77   :  { %v1299_v34 = vmul.f32 %v1297_v46, %v1288_v18 }
0x1c79   :  { %1301 = vrot.lane.b32.xlu0 %v1299_v34, %s1679_s3 }
0x1ceb   :  { %v1302_v38 = vpop.permute.xlu0 %1301 }
0x1cec   :  { %v1304_v39 = vadd.f32 %v1302_v38, %v1294_v10 }
0x1cee   :  { %1541 = vtanh.f32 %v1304_v39 }
0x1cf4   :  { %v1542_v40 = vpop.eup %1541 }
0x1cf5   :  { %1307 = vrot.lane.b32.xlu1 %v1542_v40, %s1678_s15 }
0x1d67   :  { %v1308_v35 = vpop.permute.xlu1 %1307 }
0x1d68   :  { %v1310_v42 = vmul.f32 %v1308_v35, %v1288_v18 }
0x1d6a   :  { %v1320_v36 = vrot.slane %v1310_v42, 6 }
0x1d6c   :  { %1321 = vrot.lane.b32.xlu2 %v1320_v36, %s1679_s3 }
0x1dc6   :  { %v1322_v44 = vpop.permute.xlu2 %1321 }
0x1dc7   :  { %1401 = vmatmul.msk.f32.vlgmr.msrb.gmra.mxu1 %vm145_vm7, %v1322_v44 }
0x1e44   :  { %v1342_v47 = vpop.f32.mrf.mxu1 }
0x1e45   :  { %v1343_v14 = vadd.f32 %v1414_v45, %v1342_v47 }
0x1e47   :  { %1346 = vst.msk [vmem:[#allocation11] sm:$0x3] %vm1345_vm11, %v1343_v14 }
0x1e48   :  { %1357 = dma.vmem_to_hbm [thread:$0]  %s1353_s27, 32, %s1355_s7, [#allocation5]  }
0x1e49   :  { %1669 = dma.done.wait [#allocation5], 32  }
0x1e4a   :  { %1670 = vsyncadd [#allocation5], 4294967264 }
0x1e4b   :  { %1362 = vsyncpa [#allocation4], 1 }
0x1e4c   :  { %1363 = vsyncpa [#allocation7], 1 }
0x1e4d   :  { %1364 = vsyncpa [#allocation10], 1 }
0x1e4e   :  { %1365 = vsyncpa [#allocation5], 1 }

</bundles_post_ra>
